<compile_context>
chip_gen: v5e
topology: v5e:2x2
jax: 0.10.0
libtpu: 0.0.40
codegen_flags: <defaults>
</compile_context>

<pallas_src>
import functools
import numpy as np
import jax
import jax.numpy as jnp
from jax.experimental import pallas as pl
from jax.experimental.pallas import tpu as pltpu

_SQRT1_2 = 0.7071067811865476


def _recip(x):
    """EUP approximate reciprocal refined with one Newton-Raphson step."""
    r = pl.reciprocal(x, approx=True)
    return r * (2.0 - x * r)


def _mamba_kernel(gam_ref, x_ref,
                  w_in_ref, b_in_ref, conv_w_ref, conv_b_ref,
                  w_xp_ref, b_xp_ref, w_g_ref, b_g_ref, w_out_ref, b_out_ref,
                  a_ref, dp_ref,
                  o_ref,
                  abar_ref, bu_ref, cy_ref,
                  *, B_tile, D_h, N, k, L, eps=1e-5):
    mm_dtype = w_in_ref.dtype            # matmul operand dtype (f32 or bf16)
    M = B_tile * L                       # stacked batch rows (MXU M dimension)
    g_in = gam_ref[0]                    # SMEM scalars
    g_out = gam_ref[1]

    # ---- RMSNorm (ln_in) on the batch-row-stacked (M, D) tile ----
    x = x_ref[...].reshape(M, x_ref.shape[-1]).astype(jnp.float32)
    rms_in = jnp.sqrt(jnp.mean(x * x, axis=-1, keepdims=True))
    xn = x * (g_in * _recip(rms_in + eps))

    # ---- W_in: (M, D) @ (D, 2*D_h), f32 accumulate ----
    z = jnp.dot(xn.astype(mm_dtype), w_in_ref[...],
                preferred_element_type=jnp.float32) + b_in_ref[...]
    u0 = z[:, :D_h]                                           # (M, D_h)
    g = z[:, D_h:]                                            # (M, D_h)

    # ---- depthwise conv1d along time ('same' padding), per batch row-block,
    #      via sublane rolls + edge masks (no zero-pad copies) ----
    pad = k // 2
    row = jax.lax.broadcasted_iota(jnp.int32, (L, D_h), 0)
    u_parts = []
    for b in range(B_tile):                                   # B_tile tiny & static
        u0_b = u0[b * L:(b + 1) * L, :]                       # (L, D_h)
        acc = jnp.zeros((L, D_h), jnp.float32) + conv_b_ref[...]
        for j in range(k):                                    # k tiny & static
            shift = pad - j
            if shift == 0:
                shifted = u0_b
            else:
                shifted = pltpu.roll(u0_b, shift=shift % L, axis=0)
                shifted = jnp.where((row >= shift) & (row < L + shift), shifted, 0.0)
            acc = acc + shifted * conv_w_ref[j:j + 1, :]
        u_parts.append(jax.nn.sigmoid(acc))
    u = u_parts[0] if B_tile == 1 else jnp.concatenate(u_parts, axis=0)   # (M, D_h)

    # ---- x_proj: (M, D_h) @ (D_h, (2N+1)*D_h); columns permuted so B/C come
    #      out as N contiguous D_h-wide lane groups ----
    # TODO(synk): tile W_xp columns / single-buffer weights (pl.Buffered(1)) at
    # production shapes so the weight set fits v7x's 64 MiB VMEM.
    ssm = jnp.dot(u.astype(mm_dtype), w_xp_ref[...],
                  preferred_element_type=jnp.float32) + b_xp_ref[...]
    b_flat = ssm[:, :N * D_h]                                 # B_raw, lane group n
    c_flat = ssm[:, N * D_h:2 * N * D_h]                      # C_raw, lane group n
    delta = ssm[:, 2 * N * D_h:]                              # (M, D_h)
    du = delta * u                                            # computed once

    # ---- hoisted scan pre-compute, written straight into the sublane-dense
    #      (L, B_tile*N, D_h) scratches (no concatenated temporaries) ----
    for b in range(B_tile):
        r0 = b * L
        delta_b = delta[r0:r0 + L, :]
        du_b = du[r0:r0 + L, :]
        for n in range(N):
            grp = b * N + n
            c0 = n * D_h
            a_n = a_ref[n:n + 1, :]                           # (1, D_h)
            abar_ref[:, grp:grp + 1, :] = jnp.exp(-delta_b * a_n)[:, None, :]
            bu_ref[:, grp:grp + 1, :] = (du_b * b_flat[r0:r0 + L, c0:c0 + D_h])[:, None, :]
            cy_ref[:, grp:grp + 1, :] = c_flat[r0:r0 + L, c0:c0 + D_h][:, None, :]

    # ---- sequential selective scan: dense (B_tile*N, D_h) carry and tiles,
    #      C multiply fused (cy_ref holds C before the scan, C*state after) ----
    # TODO(synk): for production L switch to a chunked scan (within-chunk
    # cumulative abar products, carry only chunk-boundary state) behind an
    # "arbitrary" time-chunk grid axis.
    BN = B_tile * N

    def scan_body(t, state):
        state = abar_ref[t] * state + bu_ref[t]
        cy_ref[t] = cy_ref[t] * state
        return state

    jax.lax.fori_loop(0, L, scan_body, jnp.zeros((BN, D_h), jnp.float32),
                      unroll=True if L <= 16 else 8)

    # ---- N-way state reduction as a tree of VPU adds (no identity matmul) ----
    cy = cy_ref[...]                                          # (L, BN, D_h)
    ys = []
    for b in range(B_tile):
        y_b = cy[:, b * N, :]
        for n in range(1, N):
            y_b = y_b + cy[:, b * N + n, :]
        ys.append(y_b)                                        # (L, D_h)
    y_ssm = ys[0] if B_tile == 1 else jnp.concatenate(ys, axis=0)   # (M, D_h)
    h = y_ssm + dp_ref[...] * u

    # ---- gate, exact GELU, output projection ----
    gz = jax.nn.sigmoid(jnp.dot(g.astype(mm_dtype), w_g_ref[...],
                                preferred_element_type=jnp.float32) + b_g_ref[...])
    v = gz * h
    y = 0.5 * v * (1.0 + jax.lax.erf(v * _SQRT1_2))
    o = jnp.dot(y.astype(mm_dtype), w_out_ref[...],
                preferred_element_type=jnp.float32) + b_out_ref[...]

    # ---- residual (normalized input, as in the torch forward) + ln_out ----
    res = xn + o
    rms_out = jnp.sqrt(jnp.mean(res * res, axis=-1, keepdims=True))
    out = res * (g_out * _recip(rms_out + eps))
    o_ref[...] = out.reshape(o_ref.shape).astype(o_ref.dtype)


def mamba_block_pallas(x, gammas, kparams, *, D_h, N, k, B_tile=None):
    B, L, D = x.shape
    if B_tile is None:
        # Batch-row blocking: stack batch rows so the MXU sees a reasonable M
        # when L is small.
        B_tile = max(1, min(B, 256 // max(L, 1)))
        while B % B_tile != 0:
            B_tile -= 1
    assert B % B_tile == 0
    kernel = functools.partial(_mamba_kernel, B_tile=B_tile, D_h=D_h, N=N, k=k, L=L)
    in_specs = [
        pl.BlockSpec(memory_space=pltpu.MemorySpace.SMEM),     # gammas (scalars)
        pl.BlockSpec((B_tile, L, D), lambda i: (i, 0, 0)),     # x
    ]
    for p in kparams:                                          # grid-invariant weights
        in_specs.append(pl.BlockSpec(p.shape, lambda i, _nd=p.ndim: (0,) * _nd))
    BN = B_tile * N
    scratch_shapes = [
        pltpu.VMEM((L, BN, D_h), jnp.float32),                 # exp(-delta*A)
        pltpu.VMEM((L, BN, D_h), jnp.float32),                 # delta*u*B
        pltpu.VMEM((L, BN, D_h), jnp.float32),                 # C, then C*state
    ]
    return pl.pallas_call(
        kernel,
        out_shape=jax.ShapeDtypeStruct((B, L, D), x.dtype),
        grid=(B // B_tile,),
        in_specs=in_specs,
        out_specs=pl.BlockSpec((B_tile, L, D), lambda i: (i, 0, 0)),
        scratch_shapes=scratch_shapes,
        compiler_params=pltpu.CompilerParams(
            dimension_semantics=("parallel",),
            vmem_limit_bytes=64 * 1024 * 1024),
    )(gammas, x, *kparams)


def prepare_params(W_in, b_in, conv_w, conv_b, W_xp, b_xp, W_g, b_g,
                   W_out, b_out, A, Dp, *, D_h, N, matmul_dtype=jnp.float32):
    """Torch-layout params -> kernel params (permuted / casted). No eye matrix."""
    # Permute x_proj columns so B/C come out as N contiguous D_h-wide lane
    # groups (replaces the torch reshape(B, L, D_h, N)).
    idx = (np.arange(D_h)[None, :] * N + np.arange(N)[:, None]).reshape(-1)
    perm = np.concatenate([idx, N * D_h + idx, 2 * N * D_h + np.arange(D_h)])
    W_xp_k = jnp.asarray(W_xp)[:, perm]
    b_xp_k = jnp.asarray(b_xp)[perm]
    md = matmul_dtype
    return (
        jnp.asarray(W_in, md), jnp.asarray(b_in, jnp.float32).reshape(1, -1),
        jnp.asarray(conv_w, jnp.float32), jnp.asarray(conv_b, jnp.float32).reshape(1, -1),
        W_xp_k.astype(md), b_xp_k.astype(jnp.float32).reshape(1, -1),
        jnp.asarray(W_g, md), jnp.asarray(b_g, jnp.float32).reshape(1, -1),
        jnp.asarray(W_out, md), jnp.asarray(b_out, jnp.float32).reshape(1, -1),
        jnp.asarray(A, jnp.float32).T,                          # (N, D_h), row n = A[:, n]
        jnp.asarray(Dp, jnp.float32).reshape(1, -1),
    )


def mamba_block_reference(x, gamma_in, gamma_out, W_in, b_in, conv_w, conv_b,
                          W_xp, b_xp, W_g, b_g, W_out, b_out, A, Dp,
                          *, D_h, N, k, eps=1e-5):
    """Pure-JAX reference mirroring the PyTorch forward (torch weight layout)."""
    Bsz, L, D = x.shape

    def rmsnorm(v, gamma):
        n = jnp.sqrt(jnp.mean(v * v, axis=-1, keepdims=True))
        return v * gamma / (n + eps)

    xn = rmsnorm(x, gamma_in)
    z = xn @ W_in + b_in
    u0, g = z[..., :D_h], z[..., D_h:]
    pad = k // 2
    u_pad = jnp.pad(u0, ((0, 0), (pad, pad), (0, 0)))
    acc = jnp.zeros_like(u0) + conv_b
    for j in range(k):
        acc = acc + u_pad[:, j:j + L, :] * conv_w[j]
    u = jax.nn.sigmoid(acc)
    ssm = u @ W_xp + b_xp
    B_raw = ssm[..., :N * D_h].reshape(Bsz, L, D_h, N)
    C_raw = ssm[..., N * D_h:2 * N * D_h].reshape(Bsz, L, D_h, N)
    delta = ssm[..., 2 * N * D_h:]
    A_bar = jnp.exp(-delta[..., None] * A[None, None])
    Bu = (delta * u)[..., None] * B_raw
    state = jnp.zeros((Bsz, D_h, N), x.dtype)
    ys = []
    for t in range(L):
        state = A_bar[:, t] * state + Bu[:, t]
        ys.append(jnp.sum(C_raw[:, t] * state, axis=-1))
    h = jnp.stack(ys, axis=1) + Dp[None, None, :] * u
    gz = jax.nn.sigmoid(g @ W_g + b_g)
    v = gz * h
    y = 0.5 * v * (1.0 + jax.lax.erf(v * _SQRT1_2))
    o = y @ W_out + b_out
    return rmsnorm(xn + o, gamma_out)


if __name__ == "__main__":
    # Small shapes consistent with MambaArgs(D=16, N=8, mult=2, k=3).
    B, L, D, N, mult, k = 2, 8, 16, 8, 2, 3
    D_h = D * mult

    key = jax.random.PRNGKey(0)
    ks = jax.random.split(key, 12)
    scale = 0.1
    x = jax.random.normal(ks[0], (B, L, D), jnp.float32)

    # Parameters (torch-equivalent shapes; Linear weights stored pre-transposed
    # as (in, out) so the kernel computes x @ W).
    W_in = jax.random.normal(ks[1], (D, 2 * D_h), jnp.float32) * scale
    b_in = jax.random.normal(ks[2], (2 * D_h,), jnp.float32) * scale
    conv_w = jax.random.normal(ks[3], (k, D_h), jnp.float32) * scale   # torch (D_h,1,k) transposed
    conv_b = jax.random.normal(ks[4], (D_h,), jnp.float32) * scale
    W_xp = jax.random.normal(ks[5], (D_h, (2 * N + 1) * D_h), jnp.float32) * scale
    b_xp = jax.random.normal(ks[6], ((2 * N + 1) * D_h,), jnp.float32) * scale
    W_g = jax.random.normal(ks[7], (D_h, D_h), jnp.float32) * scale
    b_g = jax.random.normal(ks[8], (D_h,), jnp.float32) * scale
    W_out = jax.random.normal(ks[9], (D_h, D), jnp.float32) * scale
    b_out = jax.random.normal(ks[10], (D,), jnp.float32) * scale
    A = jnp.ones((D_h, N), jnp.float32) / D_h                          # as in __init__
    Dp = jnp.ones((D_h,), jnp.float32) / D_h
    gamma_in, gamma_out = 1.0, 1.0
    gammas = jnp.array([gamma_in, gamma_out], jnp.float32)             # SMEM scalars

    torch_params = (W_in, b_in, conv_w, conv_b, W_xp, b_xp, W_g, b_g,
                    W_out, b_out, A, Dp)

    ref = jax.block_until_ready(
        mamba_block_reference(x, gamma_in, gamma_out, *torch_params,
                              D_h=D_h, N=N, k=k))

    # f32 matmul path, per-batch grid (B_tile=1) and batch-row-blocked (B_tile=2).
    kp32 = prepare_params(*torch_params, D_h=D_h, N=N, matmul_dtype=jnp.float32)
    out_b1 = jax.block_until_ready(
        mamba_block_pallas(x, gammas, kp32, D_h=D_h, N=N, k=k, B_tile=1))
    out_b2 = jax.block_until_ready(
        mamba_block_pallas(x, gammas, kp32, D_h=D_h, N=N, k=k, B_tile=2))
    err_b1 = float(jnp.max(jnp.abs(out_b1 - ref)))
    err_b2 = float(jnp.max(jnp.abs(out_b2 - ref)))

    # bf16 matmul path (weights + MXU operands bf16; f32 accumulate/scan/norms).
    kpbf = prepare_params(*torch_params, D_h=D_h, N=N, matmul_dtype=jnp.bfloat16)
    outbf = jax.block_until_ready(
        mamba_block_pallas(x, gammas, kpbf, D_h=D_h, N=N, k=k))
    errbf = float(jnp.max(jnp.abs(outbf - ref)))

    # f32 path now uses a Newton-refined reciprocal -> tight tolerance; the bf16
    # tolerance absorbs bf16 operand rounding through four matmuls.
    assert err_b1 < 5e-3, f"f32 (B_tile=1) mismatch vs reference: {err_b1}"
    assert err_b2 < 5e-3, f"f32 (B_tile=2) mismatch vs reference: {err_b2}"
    assert errbf < 1e-1, f"bf16 mismatch vs reference: {errbf}"
    print("KERNEL_OK")
</pallas_src>

<mosaic_0001>
module attributes {stable_mosaic.version = 11 : i64} {
  func.func @_mamba_kernel(%arg0: i32, %arg1: memref<2xf32, #tpu.memory_space<smem>>, %arg2: memref<1x8x16xf32, #tpu.memory_space<vmem>>, %arg3: memref<16x64xf32, #tpu.memory_space<vmem>>, %arg4: memref<1x64xf32, #tpu.memory_space<vmem>>, %arg5: memref<3x32xf32, #tpu.memory_space<vmem>>, %arg6: memref<1x32xf32, #tpu.memory_space<vmem>>, %arg7: memref<32x544xf32, #tpu.memory_space<vmem>>, %arg8: memref<1x544xf32, #tpu.memory_space<vmem>>, %arg9: memref<32x32xf32, #tpu.memory_space<vmem>>, %arg10: memref<1x32xf32, #tpu.memory_space<vmem>>, %arg11: memref<32x16xf32, #tpu.memory_space<vmem>>, %arg12: memref<1x16xf32, #tpu.memory_space<vmem>>, %arg13: memref<8x32xf32, #tpu.memory_space<vmem>>, %arg14: memref<1x32xf32, #tpu.memory_space<vmem>>, %arg15: memref<1x8x16xf32, #tpu.memory_space<vmem>>, %arg16: memref<8x8x32xf32, #tpu.memory_space<vmem>>, %arg17: memref<8x8x32xf32, #tpu.memory_space<vmem>>, %arg18: memref<8x8x32xf32, #tpu.memory_space<vmem>>) attributes {dimension_semantics = [#tpu.dimension_semantics<parallel>], iteration_bounds = array<i64: 2>, scalar_prefetch = 0 : i64, scratch_operands = 3 : i64, tpu.core_type = #tpu.core_type<tc>, window_params = [{transform_indices = @transform_0, window_bounds = array<i64: 2>}, {transform_indices = @transform_1, window_bounds = array<i64: 1, 8, 16>}, {pipeline_mode = #tpu.pipeline_mode<synchronous>, transform_indices = @transform_2, window_bounds = array<i64: 16, 64>}, {pipeline_mode = #tpu.pipeline_mode<synchronous>, transform_indices = @transform_3, window_bounds = array<i64: 1, 64>}, {pipeline_mode = #tpu.pipeline_mode<synchronous>, transform_indices = @transform_4, window_bounds = array<i64: 3, 32>}, {pipeline_mode = #tpu.pipeline_mode<synchronous>, transform_indices = @transform_5, window_bounds = array<i64: 1, 32>}, {pipeline_mode = #tpu.pipeline_mode<synchronous>, transform_indices = @transform_6, window_bounds = array<i64: 32, 544>}, {pipeline_mode = #tpu.pipeline_mode<synchronous>, transform_indices = @transform_7, window_bounds = array<i64: 1, 544>}, {pipeline_mode = #tpu.pipeline_mode<synchronous>, transform_indices = @transform_8, window_bounds = array<i64: 32, 32>}, {pipeline_mode = #tpu.pipeline_mode<synchronous>, transform_indices = @transform_9, window_bounds = array<i64: 1, 32>}, {pipeline_mode = #tpu.pipeline_mode<synchronous>, transform_indices = @transform_10, window_bounds = array<i64: 32, 16>}, {pipeline_mode = #tpu.pipeline_mode<synchronous>, transform_indices = @transform_11, window_bounds = array<i64: 1, 16>}, {pipeline_mode = #tpu.pipeline_mode<synchronous>, transform_indices = @transform_12, window_bounds = array<i64: 8, 32>}, {pipeline_mode = #tpu.pipeline_mode<synchronous>, transform_indices = @transform_13, window_bounds = array<i64: 1, 32>}, {transform_indices = @transform_14, window_bounds = array<i64: 1, 8, 16>}]} {
    %c0 = arith.constant 0 : index
    %0 = memref.load %arg1[%c0] : memref<2xf32, #tpu.memory_space<smem>>
    %c1 = arith.constant 1 : index
    %1 = memref.load %arg1[%c1] : memref<2xf32, #tpu.memory_space<smem>>
    %c0_0 = arith.constant 0 : index
    %c0_1 = arith.constant 0 : index
    %c0_2 = arith.constant 0 : index
    %2 = vector.load %arg2[%c0_0, %c0_1, %c0_2] : memref<1x8x16xf32, #tpu.memory_space<vmem>>, vector<1x8x16xf32>
    %3 = vector.shape_cast %2 : vector<1x8x16xf32> to vector<8x16xf32>
    %4 = arith.mulf %3, %3 : vector<8x16xf32>
    %cst = arith.constant dense<0.000000e+00> : vector<8xf32>
    %5 = vector.multi_reduction <add>, %4, %cst [1] : vector<8x16xf32> to vector<8xf32>
    %6 = vector.shape_cast %5 : vector<8xf32> to vector<8x1xf32>
    %cst_3 = arith.constant 1.600000e+01 : f32
    %7 = vector.broadcast %cst_3 : f32 to vector<8x1xf32>
    %8 = arith.divf %6, %7 : vector<8x1xf32>
    %9 = math.sqrt %8 : vector<8x1xf32>
    %cst_4 = arith.constant 9.99999974E-6 : f32
    %10 = vector.broadcast %cst_4 : f32 to vector<8x1xf32>
    %11 = arith.addf %9, %10 : vector<8x1xf32>
    %12 = tpu.reciprocal %11 {approx = true} : vector<8x1xf32> -> vector<8x1xf32>
    %13 = arith.mulf %11, %12 : vector<8x1xf32>
    %cst_5 = arith.constant 2.000000e+00 : f32
    %14 = vector.broadcast %cst_5 : f32 to vector<8x1xf32>
    %15 = arith.subf %14, %13 : vector<8x1xf32>
    %16 = arith.mulf %12, %15 : vector<8x1xf32>
    %17 = vector.broadcast %0 : f32 to vector<8x1xf32>
    %18 = arith.mulf %17, %16 : vector<8x1xf32>
    %19 = vector.broadcast %18 : vector<8x1xf32> to vector<8x16xf32>
    %20 = arith.mulf %3, %19 : vector<8x16xf32>
    %c0_6 = arith.constant 0 : index
    %c0_7 = arith.constant 0 : index
    %21 = vector.load %arg3[%c0_6, %c0_7] : memref<16x64xf32, #tpu.memory_space<vmem>>, vector<16x64xf32>
    %cst_8 = arith.constant dense<0.000000e+00> : vector<8x64xf32>
    %22 = tpu.matmul %20, %21, %cst_8 {dimension_numbers = #tpu.dot_dimension_numbers<[1], [0], [0], [1], [0, 0, 1, 1], [], []>} : vector<8x16xf32>, vector<16x64xf32>, vector<8x64xf32> -> vector<8x64xf32>
    %c0_9 = arith.constant 0 : index
    %c0_10 = arith.constant 0 : index
    %23 = vector.load %arg4[%c0_9, %c0_10] : memref<1x64xf32, #tpu.memory_space<vmem>>, vector<1x64xf32>
    %24 = vector.broadcast %23 : vector<1x64xf32> to vector<8x64xf32>
    %25 = arith.addf %22, %24 : vector<8x64xf32>
    %26 = vector.extract_strided_slice %25 {offsets = [0, 0], sizes = [8, 32], strides = [1, 1]} : vector<8x64xf32> to vector<8x32xf32>
    %27 = vector.extract_strided_slice %25 {offsets = [0, 32], sizes = [8, 32], strides = [1, 1]} : vector<8x64xf32> to vector<8x32xf32>
    %28 = tpu.iota {dimensions = array<i32: 0>} : vector<8x32xi32>
    %cst_11 = arith.constant 0.000000e+00 : f32
    %29 = vector.broadcast %cst_11 : f32 to vector<8x32xf32>
    %c0_12 = arith.constant 0 : index
    %c0_13 = arith.constant 0 : index
    %30 = vector.load %arg6[%c0_12, %c0_13] : memref<1x32xf32, #tpu.memory_space<vmem>>, vector<1x32xf32>
    %31 = vector.broadcast %30 : vector<1x32xf32> to vector<8x32xf32>
    %32 = arith.addf %29, %31 : vector<8x32xf32>
    %c1_i32 = arith.constant 1 : i32
    %33 = tpu.dynamic_rotate %26 by %c1_i32 dim 0 : vector<8x32xf32>, i32 -> vector<8x32xf32>
    %c1_i32_14 = arith.constant 1 : i32
    %34 = vector.broadcast %c1_i32_14 : i32 to vector<8x32xi32>
    %35 = arith.cmpi sge, %28, %34 : vector<8x32xi32>
    %c9_i32 = arith.constant 9 : i32
    %36 = vector.broadcast %c9_i32 : i32 to vector<8x32xi32>
    %37 = arith.cmpi slt, %28, %36 : vector<8x32xi32>
    %38 = arith.andi %35, %37 : vector<8x32xi1>
    %cst_15 = arith.constant 0.000000e+00 : f32
    %39 = vector.broadcast %cst_15 : f32 to vector<8x32xf32>
    %40 = arith.select %38, %33, %39 : vector<8x32xi1>, vector<8x32xf32>
    %c0_16 = arith.constant 0 : index
    %c0_17 = arith.constant 0 : index
    %41 = vector.load %arg5[%c0_16, %c0_17] : memref<3x32xf32, #tpu.memory_space<vmem>>, vector<1x32xf32>
    %42 = vector.broadcast %41 : vector<1x32xf32> to vector<8x32xf32>
    %43 = arith.mulf %40, %42 : vector<8x32xf32>
    %44 = arith.addf %32, %43 : vector<8x32xf32>
    %c1_18 = arith.constant 1 : index
    %c0_19 = arith.constant 0 : index
    %45 = vector.load %arg5[%c1_18, %c0_19] : memref<3x32xf32, #tpu.memory_space<vmem>>, vector<1x32xf32>
    %46 = vector.broadcast %45 : vector<1x32xf32> to vector<8x32xf32>
    %47 = arith.mulf %26, %46 : vector<8x32xf32>
    %48 = arith.addf %44, %47 : vector<8x32xf32>
    %c7_i32 = arith.constant 7 : i32
    %49 = tpu.dynamic_rotate %26 by %c7_i32 dim 0 : vector<8x32xf32>, i32 -> vector<8x32xf32>
    %c-1_i32 = arith.constant -1 : i32
    %50 = vector.broadcast %c-1_i32 : i32 to vector<8x32xi32>
    %51 = arith.cmpi sge, %28, %50 : vector<8x32xi32>
    %c7_i32_20 = arith.constant 7 : i32
    %52 = vector.broadcast %c7_i32_20 : i32 to vector<8x32xi32>
    %53 = arith.cmpi slt, %28, %52 : vector<8x32xi32>
    %54 = arith.andi %51, %53 : vector<8x32xi1>
    %cst_21 = arith.constant 0.000000e+00 : f32
    %55 = vector.broadcast %cst_21 : f32 to vector<8x32xf32>
    %56 = arith.select %54, %49, %55 : vector<8x32xi1>, vector<8x32xf32>
    %c2 = arith.constant 2 : index
    %c0_22 = arith.constant 0 : index
    %57 = vector.load %arg5[%c2, %c0_22] : memref<3x32xf32, #tpu.memory_space<vmem>>, vector<1x32xf32>
    %58 = vector.broadcast %57 : vector<1x32xf32> to vector<8x32xf32>
    %59 = arith.mulf %56, %58 : vector<8x32xf32>
    %60 = arith.addf %48, %59 : vector<8x32xf32>
    %61 = arith.negf %60 : vector<8x32xf32>
    %62 = math.exp %61 : vector<8x32xf32>
    %cst_23 = arith.constant 1.000000e+00 : f32
    %63 = vector.broadcast %cst_23 : f32 to vector<8x32xf32>
    %64 = arith.addf %63, %62 : vector<8x32xf32>
    %65 = arith.divf %63, %64 : vector<8x32xf32>
    %c0_24 = arith.constant 0 : index
    %c0_25 = arith.constant 0 : index
    %66 = vector.load %arg7[%c0_24, %c0_25] : memref<32x544xf32, #tpu.memory_space<vmem>>, vector<32x544xf32>
    %cst_26 = arith.constant dense<0.000000e+00> : vector<8x544xf32>
    %67 = tpu.matmul %65, %66, %cst_26 {dimension_numbers = #tpu.dot_dimension_numbers<[1], [0], [0], [1], [0, 0, 1, 1], [], []>} : vector<8x32xf32>, vector<32x544xf32>, vector<8x544xf32> -> vector<8x544xf32>
    %c0_27 = arith.constant 0 : index
    %c0_28 = arith.constant 0 : index
    %68 = vector.load %arg8[%c0_27, %c0_28] : memref<1x544xf32, #tpu.memory_space<vmem>>, vector<1x544xf32>
    %69 = vector.broadcast %68 : vector<1x544xf32> to vector<8x544xf32>
    %70 = arith.addf %67, %69 : vector<8x544xf32>
    %71 = vector.extract_strided_slice %70 {offsets = [0, 0], sizes = [8, 256], strides = [1, 1]} : vector<8x544xf32> to vector<8x256xf32>
    %72 = vector.extract_strided_slice %70 {offsets = [0, 256], sizes = [8, 256], strides = [1, 1]} : vector<8x544xf32> to vector<8x256xf32>
    %73 = vector.extract_strided_slice %70 {offsets = [0, 512], sizes = [8, 32], strides = [1, 1]} : vector<8x544xf32> to vector<8x32xf32>
    %74 = arith.mulf %73, %65 : vector<8x32xf32>
    %c0_29 = arith.constant 0 : index
    %c0_30 = arith.constant 0 : index
    %75 = vector.load %arg13[%c0_29, %c0_30] : memref<8x32xf32, #tpu.memory_space<vmem>>, vector<1x32xf32>
    %cst_31 = arith.constant 0.000000e+00 : f32
    %76 = vector.broadcast %cst_31 : f32 to vector<8x32xf32>
    %77 = arith.subf %76, %73 : vector<8x32xf32>
    %78 = vector.broadcast %75 : vector<1x32xf32> to vector<8x32xf32>
    %79 = arith.mulf %77, %78 : vector<8x32xf32>
    %80 = math.exp %79 : vector<8x32xf32>
    %81 = vector.shape_cast %80 : vector<8x32xf32> to vector<8x1x32xf32>
    %c0_32 = arith.constant 0 : index
    %c0_33 = arith.constant 0 : index
    %c0_34 = arith.constant 0 : index
    %82 = vector.load %arg16[%c0_32, %c0_33, %c0_34] : memref<8x8x32xf32, #tpu.memory_space<vmem>>, vector<8x1x32xf32>
    tpu.vector_store %arg16[%c0_32, %c0_33, %c0_34], %81 {strides = array<i32>} : memref<8x8x32xf32, #tpu.memory_space<vmem>>, vector<8x1x32xf32>,
    %83 = vector.extract_strided_slice %71 {offsets = [0, 0], sizes = [8, 32], strides = [1, 1]} : vector<8x256xf32> to vector<8x32xf32>
    %84 = arith.mulf %74, %83 : vector<8x32xf32>
    %85 = vector.shape_cast %84 : vector<8x32xf32> to vector<8x1x32xf32>
    %c0_35 = arith.constant 0 : index
    %c0_36 = arith.constant 0 : index
    %c0_37 = arith.constant 0 : index
    %86 = vector.load %arg17[%c0_35, %c0_36, %c0_37] : memref<8x8x32xf32, #tpu.memory_space<vmem>>, vector<8x1x32xf32>
    tpu.vector_store %arg17[%c0_35, %c0_36, %c0_37], %85 {strides = array<i32>} : memref<8x8x32xf32, #tpu.memory_space<vmem>>, vector<8x1x32xf32>,
    %87 = vector.extract_strided_slice %72 {offsets = [0, 0], sizes = [8, 32], strides = [1, 1]} : vector<8x256xf32> to vector<8x32xf32>
    %88 = vector.shape_cast %87 : vector<8x32xf32> to vector<8x1x32xf32>
    %c0_38 = arith.constant 0 : index
    %c0_39 = arith.constant 0 : index
    %c0_40 = arith.constant 0 : index
    %89 = vector.load %arg18[%c0_38, %c0_39, %c0_40] : memref<8x8x32xf32, #tpu.memory_space<vmem>>, vector<8x1x32xf32>
    tpu.vector_store %arg18[%c0_38, %c0_39, %c0_40], %88 {strides = array<i32>} : memref<8x8x32xf32, #tpu.memory_space<vmem>>, vector<8x1x32xf32>,
    %c1_41 = arith.constant 1 : index
    %c0_42 = arith.constant 0 : index
    %90 = vector.load %arg13[%c1_41, %c0_42] : memref<8x32xf32, #tpu.memory_space<vmem>>, vector<1x32xf32>
    %cst_43 = arith.constant 0.000000e+00 : f32
    %91 = vector.broadcast %cst_43 : f32 to vector<8x32xf32>
    %92 = arith.subf %91, %73 : vector<8x32xf32>
    %93 = vector.broadcast %90 : vector<1x32xf32> to vector<8x32xf32>
    %94 = arith.mulf %92, %93 : vector<8x32xf32>
    %95 = math.exp %94 : vector<8x32xf32>
    %96 = vector.shape_cast %95 : vector<8x32xf32> to vector<8x1x32xf32>
    %c0_44 = arith.constant 0 : index
    %c1_45 = arith.constant 1 : index
    %c0_46 = arith.constant 0 : index
    %97 = vector.load %arg16[%c0_44, %c1_45, %c0_46] : memref<8x8x32xf32, #tpu.memory_space<vmem>>, vector<8x1x32xf32>
    tpu.vector_store %arg16[%c0_44, %c1_45, %c0_46], %96 {strides = array<i32>} : memref<8x8x32xf32, #tpu.memory_space<vmem>>, vector<8x1x32xf32>,
    %98 = vector.extract_strided_slice %71 {offsets = [0, 32], sizes = [8, 32], strides = [1, 1]} : vector<8x256xf32> to vector<8x32xf32>
    %99 = arith.mulf %74, %98 : vector<8x32xf32>
    %100 = vector.shape_cast %99 : vector<8x32xf32> to vector<8x1x32xf32>
    %c0_47 = arith.constant 0 : index
    %c1_48 = arith.constant 1 : index
    %c0_49 = arith.constant 0 : index
    %101 = vector.load %arg17[%c0_47, %c1_48, %c0_49] : memref<8x8x32xf32, #tpu.memory_space<vmem>>, vector<8x1x32xf32>
    tpu.vector_store %arg17[%c0_47, %c1_48, %c0_49], %100 {strides = array<i32>} : memref<8x8x32xf32, #tpu.memory_space<vmem>>, vector<8x1x32xf32>,
    %102 = vector.extract_strided_slice %72 {offsets = [0, 32], sizes = [8, 32], strides = [1, 1]} : vector<8x256xf32> to vector<8x32xf32>
    %103 = vector.shape_cast %102 : vector<8x32xf32> to vector<8x1x32xf32>
    %c0_50 = arith.constant 0 : index
    %c1_51 = arith.constant 1 : index
    %c0_52 = arith.constant 0 : index
    %104 = vector.load %arg18[%c0_50, %c1_51, %c0_52] : memref<8x8x32xf32, #tpu.memory_space<vmem>>, vector<8x1x32xf32>
    tpu.vector_store %arg18[%c0_50, %c1_51, %c0_52], %103 {strides = array<i32>} : memref<8x8x32xf32, #tpu.memory_space<vmem>>, vector<8x1x32xf32>,
    %c2_53 = arith.constant 2 : index
    %c0_54 = arith.constant 0 : index
    %105 = vector.load %arg13[%c2_53, %c0_54] : memref<8x32xf32, #tpu.memory_space<vmem>>, vector<1x32xf32>
    %cst_55 = arith.constant 0.000000e+00 : f32
    %106 = vector.broadcast %cst_55 : f32 to vector<8x32xf32>
    %107 = arith.subf %106, %73 : vector<8x32xf32>
    %108 = vector.broadcast %105 : vector<1x32xf32> to vector<8x32xf32>
    %109 = arith.mulf %107, %108 : vector<8x32xf32>
    %110 = math.exp %109 : vector<8x32xf32>
    %111 = vector.shape_cast %110 : vector<8x32xf32> to vector<8x1x32xf32>
    %c0_56 = arith.constant 0 : index
    %c2_57 = arith.constant 2 : index
    %c0_58 = arith.constant 0 : index
    %112 = vector.load %arg16[%c0_56, %c2_57, %c0_58] : memref<8x8x32xf32, #tpu.memory_space<vmem>>, vector<8x1x32xf32>
    tpu.vector_store %arg16[%c0_56, %c2_57, %c0_58], %111 {strides = array<i32>} : memref<8x8x32xf32, #tpu.memory_space<vmem>>, vector<8x1x32xf32>,
    %113 = vector.extract_strided_slice %71 {offsets = [0, 64], sizes = [8, 32], strides = [1, 1]} : vector<8x256xf32> to vector<8x32xf32>
    %114 = arith.mulf %74, %113 : vector<8x32xf32>
    %115 = vector.shape_cast %114 : vector<8x32xf32> to vector<8x1x32xf32>
    %c0_59 = arith.constant 0 : index
    %c2_60 = arith.constant 2 : index
    %c0_61 = arith.constant 0 : index
    %116 = vector.load %arg17[%c0_59, %c2_60, %c0_61] : memref<8x8x32xf32, #tpu.memory_space<vmem>>, vector<8x1x32xf32>
    tpu.vector_store %arg17[%c0_59, %c2_60, %c0_61], %115 {strides = array<i32>} : memref<8x8x32xf32, #tpu.memory_space<vmem>>, vector<8x1x32xf32>,
    %117 = vector.extract_strided_slice %72 {offsets = [0, 64], sizes = [8, 32], strides = [1, 1]} : vector<8x256xf32> to vector<8x32xf32>
    %118 = vector.shape_cast %117 : vector<8x32xf32> to vector<8x1x32xf32>
    %c0_62 = arith.constant 0 : index
    %c2_63 = arith.constant 2 : index
    %c0_64 = arith.constant 0 : index
    %119 = vector.load %arg18[%c0_62, %c2_63, %c0_64] : memref<8x8x32xf32, #tpu.memory_space<vmem>>, vector<8x1x32xf32>
    tpu.vector_store %arg18[%c0_62, %c2_63, %c0_64], %118 {strides = array<i32>} : memref<8x8x32xf32, #tpu.memory_space<vmem>>, vector<8x1x32xf32>,
    %c3 = arith.constant 3 : index
    %c0_65 = arith.constant 0 : index
    %120 = vector.load %arg13[%c3, %c0_65] : memref<8x32xf32, #tpu.memory_space<vmem>>, vector<1x32xf32>
    %cst_66 = arith.constant 0.000000e+00 : f32
    %121 = vector.broadcast %cst_66 : f32 to vector<8x32xf32>
    %122 = arith.subf %121, %73 : vector<8x32xf32>
    %123 = vector.broadcast %120 : vector<1x32xf32> to vector<8x32xf32>
    %124 = arith.mulf %122, %123 : vector<8x32xf32>
    %125 = math.exp %124 : vector<8x32xf32>
    %126 = vector.shape_cast %125 : vector<8x32xf32> to vector<8x1x32xf32>
    %c0_67 = arith.constant 0 : index
    %c3_68 = arith.constant 3 : index
    %c0_69 = arith.constant 0 : index
    %127 = vector.load %arg16[%c0_67, %c3_68, %c0_69] : memref<8x8x32xf32, #tpu.memory_space<vmem>>, vector<8x1x32xf32>
    tpu.vector_store %arg16[%c0_67, %c3_68, %c0_69], %126 {strides = array<i32>} : memref<8x8x32xf32, #tpu.memory_space<vmem>>, vector<8x1x32xf32>,
    %128 = vector.extract_strided_slice %71 {offsets = [0, 96], sizes = [8, 32], strides = [1, 1]} : vector<8x256xf32> to vector<8x32xf32>
    %129 = arith.mulf %74, %128 : vector<8x32xf32>
    %130 = vector.shape_cast %129 : vector<8x32xf32> to vector<8x1x32xf32>
    %c0_70 = arith.constant 0 : index
    %c3_71 = arith.constant 3 : index
    %c0_72 = arith.constant 0 : index
    %131 = vector.load %arg17[%c0_70, %c3_71, %c0_72] : memref<8x8x32xf32, #tpu.memory_space<vmem>>, vector<8x1x32xf32>
    tpu.vector_store %arg17[%c0_70, %c3_71, %c0_72], %130 {strides = array<i32>} : memref<8x8x32xf32, #tpu.memory_space<vmem>>, vector<8x1x32xf32>,
    %132 = vector.extract_strided_slice %72 {offsets = [0, 96], sizes = [8, 32], strides = [1, 1]} : vector<8x256xf32> to vector<8x32xf32>
    %133 = vector.shape_cast %132 : vector<8x32xf32> to vector<8x1x32xf32>
    %c0_73 = arith.constant 0 : index
    %c3_74 = arith.constant 3 : index
    %c0_75 = arith.constant 0 : index
    %134 = vector.load %arg18[%c0_73, %c3_74, %c0_75] : memref<8x8x32xf32, #tpu.memory_space<vmem>>, vector<8x1x32xf32>
    tpu.vector_store %arg18[%c0_73, %c3_74, %c0_75], %133 {strides = array<i32>} : memref<8x8x32xf32, #tpu.memory_space<vmem>>, vector<8x1x32xf32>,
    %c4 = arith.constant 4 : index
    %c0_76 = arith.constant 0 : index
    %135 = vector.load %arg13[%c4, %c0_76] : memref<8x32xf32, #tpu.memory_space<vmem>>, vector<1x32xf32>
    %cst_77 = arith.constant 0.000000e+00 : f32
    %136 = vector.broadcast %cst_77 : f32 to vector<8x32xf32>
    %137 = arith.subf %136, %73 : vector<8x32xf32>
    %138 = vector.broadcast %135 : vector<1x32xf32> to vector<8x32xf32>
    %139 = arith.mulf %137, %138 : vector<8x32xf32>
    %140 = math.exp %139 : vector<8x32xf32>
    %141 = vector.shape_cast %140 : vector<8x32xf32> to vector<8x1x32xf32>
    %c0_78 = arith.constant 0 : index
    %c4_79 = arith.constant 4 : index
    %c0_80 = arith.constant 0 : index
    %142 = vector.load %arg16[%c0_78, %c4_79, %c0_80] : memref<8x8x32xf32, #tpu.memory_space<vmem>>, vector<8x1x32xf32>
    tpu.vector_store %arg16[%c0_78, %c4_79, %c0_80], %141 {strides = array<i32>} : memref<8x8x32xf32, #tpu.memory_space<vmem>>, vector<8x1x32xf32>,
    %143 = vector.extract_strided_slice %71 {offsets = [0, 128], sizes = [8, 32], strides = [1, 1]} : vector<8x256xf32> to vector<8x32xf32>
    %144 = arith.mulf %74, %143 : vector<8x32xf32>
    %145 = vector.shape_cast %144 : vector<8x32xf32> to vector<8x1x32xf32>
    %c0_81 = arith.constant 0 : index
    %c4_82 = arith.constant 4 : index
    %c0_83 = arith.constant 0 : index
    %146 = vector.load %arg17[%c0_81, %c4_82, %c0_83] : memref<8x8x32xf32, #tpu.memory_space<vmem>>, vector<8x1x32xf32>
    tpu.vector_store %arg17[%c0_81, %c4_82, %c0_83], %145 {strides = array<i32>} : memref<8x8x32xf32, #tpu.memory_space<vmem>>, vector<8x1x32xf32>,
    %147 = vector.extract_strided_slice %72 {offsets = [0, 128], sizes = [8, 32], strides = [1, 1]} : vector<8x256xf32> to vector<8x32xf32>
    %148 = vector.shape_cast %147 : vector<8x32xf32> to vector<8x1x32xf32>
    %c0_84 = arith.constant 0 : index
    %c4_85 = arith.constant 4 : index
    %c0_86 = arith.constant 0 : index
    %149 = vector.load %arg18[%c0_84, %c4_85, %c0_86] : memref<8x8x32xf32, #tpu.memory_space<vmem>>, vector<8x1x32xf32>
    tpu.vector_store %arg18[%c0_84, %c4_85, %c0_86], %148 {strides = array<i32>} : memref<8x8x32xf32, #tpu.memory_space<vmem>>, vector<8x1x32xf32>,
    %c5 = arith.constant 5 : index
    %c0_87 = arith.constant 0 : index
    %150 = vector.load %arg13[%c5, %c0_87] : memref<8x32xf32, #tpu.memory_space<vmem>>, vector<1x32xf32>
    %cst_88 = arith.constant 0.000000e+00 : f32
    %151 = vector.broadcast %cst_88 : f32 to vector<8x32xf32>
    %152 = arith.subf %151, %73 : vector<8x32xf32>
    %153 = vector.broadcast %150 : vector<1x32xf32> to vector<8x32xf32>
    %154 = arith.mulf %152, %153 : vector<8x32xf32>
    %155 = math.exp %154 : vector<8x32xf32>
    %156 = vector.shape_cast %155 : vector<8x32xf32> to vector<8x1x32xf32>
    %c0_89 = arith.constant 0 : index
    %c5_90 = arith.constant 5 : index
    %c0_91 = arith.constant 0 : index
    %157 = vector.load %arg16[%c0_89, %c5_90, %c0_91] : memref<8x8x32xf32, #tpu.memory_space<vmem>>, vector<8x1x32xf32>
    tpu.vector_store %arg16[%c0_89, %c5_90, %c0_91], %156 {strides = array<i32>} : memref<8x8x32xf32, #tpu.memory_space<vmem>>, vector<8x1x32xf32>,
    %158 = vector.extract_strided_slice %71 {offsets = [0, 160], sizes = [8, 32], strides = [1, 1]} : vector<8x256xf32> to vector<8x32xf32>
    %159 = arith.mulf %74, %158 : vector<8x32xf32>
    %160 = vector.shape_cast %159 : vector<8x32xf32> to vector<8x1x32xf32>
    %c0_92 = arith.constant 0 : index
    %c5_93 = arith.constant 5 : index
    %c0_94 = arith.constant 0 : index
    %161 = vector.load %arg17[%c0_92, %c5_93, %c0_94] : memref<8x8x32xf32, #tpu.memory_space<vmem>>, vector<8x1x32xf32>
    tpu.vector_store %arg17[%c0_92, %c5_93, %c0_94], %160 {strides = array<i32>} : memref<8x8x32xf32, #tpu.memory_space<vmem>>, vector<8x1x32xf32>,
    %162 = vector.extract_strided_slice %72 {offsets = [0, 160], sizes = [8, 32], strides = [1, 1]} : vector<8x256xf32> to vector<8x32xf32>
    %163 = vector.shape_cast %162 : vector<8x32xf32> to vector<8x1x32xf32>
    %c0_95 = arith.constant 0 : index
    %c5_96 = arith.constant 5 : index
    %c0_97 = arith.constant 0 : index
    %164 = vector.load %arg18[%c0_95, %c5_96, %c0_97] : memref<8x8x32xf32, #tpu.memory_space<vmem>>, vector<8x1x32xf32>
    tpu.vector_store %arg18[%c0_95, %c5_96, %c0_97], %163 {strides = array<i32>} : memref<8x8x32xf32, #tpu.memory_space<vmem>>, vector<8x1x32xf32>,
    %c6 = arith.constant 6 : index
    %c0_98 = arith.constant 0 : index
    %165 = vector.load %arg13[%c6, %c0_98] : memref<8x32xf32, #tpu.memory_space<vmem>>, vector<1x32xf32>
    %cst_99 = arith.constant 0.000000e+00 : f32
    %166 = vector.broadcast %cst_99 : f32 to vector<8x32xf32>
    %167 = arith.subf %166, %73 : vector<8x32xf32>
    %168 = vector.broadcast %165 : vector<1x32xf32> to vector<8x32xf32>
    %169 = arith.mulf %167, %168 : vector<8x32xf32>
    %170 = math.exp %169 : vector<8x32xf32>
    %171 = vector.shape_cast %170 : vector<8x32xf32> to vector<8x1x32xf32>
    %c0_100 = arith.constant 0 : index
    %c6_101 = arith.constant 6 : index
    %c0_102 = arith.constant 0 : index
    %172 = vector.load %arg16[%c0_100, %c6_101, %c0_102] : memref<8x8x32xf32, #tpu.memory_space<vmem>>, vector<8x1x32xf32>
    tpu.vector_store %arg16[%c0_100, %c6_101, %c0_102], %171 {strides = array<i32>} : memref<8x8x32xf32, #tpu.memory_space<vmem>>, vector<8x1x32xf32>,
    %173 = vector.extract_strided_slice %71 {offsets = [0, 192], sizes = [8, 32], strides = [1, 1]} : vector<8x256xf32> to vector<8x32xf32>
    %174 = arith.mulf %74, %173 : vector<8x32xf32>
    %175 = vector.shape_cast %174 : vector<8x32xf32> to vector<8x1x32xf32>
    %c0_103 = arith.constant 0 : index
    %c6_104 = arith.constant 6 : index
    %c0_105 = arith.constant 0 : index
    %176 = vector.load %arg17[%c0_103, %c6_104, %c0_105] : memref<8x8x32xf32, #tpu.memory_space<vmem>>, vector<8x1x32xf32>
    tpu.vector_store %arg17[%c0_103, %c6_104, %c0_105], %175 {strides = array<i32>} : memref<8x8x32xf32, #tpu.memory_space<vmem>>, vector<8x1x32xf32>,
    %177 = vector.extract_strided_slice %72 {offsets = [0, 192], sizes = [8, 32], strides = [1, 1]} : vector<8x256xf32> to vector<8x32xf32>
    %178 = vector.shape_cast %177 : vector<8x32xf32> to vector<8x1x32xf32>
    %c0_106 = arith.constant 0 : index
    %c6_107 = arith.constant 6 : index
    %c0_108 = arith.constant 0 : index
    %179 = vector.load %arg18[%c0_106, %c6_107, %c0_108] : memref<8x8x32xf32, #tpu.memory_space<vmem>>, vector<8x1x32xf32>
    tpu.vector_store %arg18[%c0_106, %c6_107, %c0_108], %178 {strides = array<i32>} : memref<8x8x32xf32, #tpu.memory_space<vmem>>, vector<8x1x32xf32>,
    %c7 = arith.constant 7 : index
    %c0_109 = arith.constant 0 : index
    %180 = vector.load %arg13[%c7, %c0_109] : memref<8x32xf32, #tpu.memory_space<vmem>>, vector<1x32xf32>
    %cst_110 = arith.constant 0.000000e+00 : f32
    %181 = vector.broadcast %cst_110 : f32 to vector<8x32xf32>
    %182 = arith.subf %181, %73 : vector<8x32xf32>
    %183 = vector.broadcast %180 : vector<1x32xf32> to vector<8x32xf32>
    %184 = arith.mulf %182, %183 : vector<8x32xf32>
    %185 = math.exp %184 : vector<8x32xf32>
    %186 = vector.shape_cast %185 : vector<8x32xf32> to vector<8x1x32xf32>
    %c0_111 = arith.constant 0 : index
    %c7_112 = arith.constant 7 : index
    %c0_113 = arith.constant 0 : index
    %187 = vector.load %arg16[%c0_111, %c7_112, %c0_113] : memref<8x8x32xf32, #tpu.memory_space<vmem>>, vector<8x1x32xf32>
    tpu.vector_store %arg16[%c0_111, %c7_112, %c0_113], %186 {strides = array<i32>} : memref<8x8x32xf32, #tpu.memory_space<vmem>>, vector<8x1x32xf32>,
    %188 = vector.extract_strided_slice %71 {offsets = [0, 224], sizes = [8, 32], strides = [1, 1]} : vector<8x256xf32> to vector<8x32xf32>
    %189 = arith.mulf %74, %188 : vector<8x32xf32>
    %190 = vector.shape_cast %189 : vector<8x32xf32> to vector<8x1x32xf32>
    %c0_114 = arith.constant 0 : index
    %c7_115 = arith.constant 7 : index
    %c0_116 = arith.constant 0 : index
    %191 = vector.load %arg17[%c0_114, %c7_115, %c0_116] : memref<8x8x32xf32, #tpu.memory_space<vmem>>, vector<8x1x32xf32>
    tpu.vector_store %arg17[%c0_114, %c7_115, %c0_116], %190 {strides = array<i32>} : memref<8x8x32xf32, #tpu.memory_space<vmem>>, vector<8x1x32xf32>,
    %192 = vector.extract_strided_slice %72 {offsets = [0, 224], sizes = [8, 32], strides = [1, 1]} : vector<8x256xf32> to vector<8x32xf32>
    %193 = vector.shape_cast %192 : vector<8x32xf32> to vector<8x1x32xf32>
    %c0_117 = arith.constant 0 : index
    %c7_118 = arith.constant 7 : index
    %c0_119 = arith.constant 0 : index
    %194 = vector.load %arg18[%c0_117, %c7_118, %c0_119] : memref<8x8x32xf32, #tpu.memory_space<vmem>>, vector<8x1x32xf32>
    tpu.vector_store %arg18[%c0_117, %c7_118, %c0_119], %193 {strides = array<i32>} : memref<8x8x32xf32, #tpu.memory_space<vmem>>, vector<8x1x32xf32>,
    %cst_120 = arith.constant 0.000000e+00 : f32
    %195 = vector.broadcast %cst_120 : f32 to vector<8x32xf32>
    %c0_i32 = arith.constant 0 : i32
    %196 = arith.index_cast %c0_i32 : i32 to index
    %c0_121 = arith.constant 0 : index
    %c0_122 = arith.constant 0 : index
    %197 = vector.load %arg16[%196, %c0_121, %c0_122] : memref<8x8x32xf32, #tpu.memory_space<vmem>>, vector<1x8x32xf32>
    %198 = vector.shape_cast %197 : vector<1x8x32xf32> to vector<8x32xf32>
    %199 = arith.mulf %198, %195 : vector<8x32xf32>
    %200 = arith.index_cast %c0_i32 : i32 to index
    %c0_123 = arith.constant 0 : index
    %c0_124 = arith.constant 0 : index
    %201 = vector.load %arg17[%200, %c0_123, %c0_124] : memref<8x8x32xf32, #tpu.memory_space<vmem>>, vector<1x8x32xf32>
    %202 = vector.shape_cast %201 : vector<1x8x32xf32> to vector<8x32xf32>
    %203 = arith.addf %199, %202 : vector<8x32xf32>
    %204 = arith.index_cast %c0_i32 : i32 to index
    %c0_125 = arith.constant 0 : index
    %c0_126 = arith.constant 0 : index
    %205 = vector.load %arg18[%204, %c0_125, %c0_126] : memref<8x8x32xf32, #tpu.memory_space<vmem>>, vector<1x8x32xf32>
    %206 = vector.shape_cast %205 : vector<1x8x32xf32> to vector<8x32xf32>
    %207 = arith.mulf %206, %203 : vector<8x32xf32>
    %208 = arith.index_cast %c0_i32 : i32 to index
    %c0_127 = arith.constant 0 : index
    %c0_128 = arith.constant 0 : index
    %209 = vector.load %arg18[%208, %c0_127, %c0_128] : memref<8x8x32xf32, #tpu.memory_space<vmem>>, vector<1x8x32xf32>
    %210 = vector.shape_cast %209 : vector<1x8x32xf32> to vector<8x32xf32>
    %211 = vector.shape_cast %207 : vector<8x32xf32> to vector<1x8x32xf32>
    tpu.vector_store %arg18[%208, %c0_127, %c0_128], %211 {strides = array<i32>} : memref<8x8x32xf32, #tpu.memory_space<vmem>>, vector<1x8x32xf32>,
    %c1_i32_129 = arith.constant 1 : i32
    %212 = arith.index_cast %c1_i32_129 : i32 to index
    %c0_130 = arith.constant 0 : index
    %c0_131 = arith.constant 0 : index
    %213 = vector.load %arg16[%212, %c0_130, %c0_131] : memref<8x8x32xf32, #tpu.memory_space<vmem>>, vector<1x8x32xf32>
    %214 = vector.shape_cast %213 : vector<1x8x32xf32> to vector<8x32xf32>
    %215 = arith.mulf %214, %203 : vector<8x32xf32>
    %216 = arith.index_cast %c1_i32_129 : i32 to index
    %c0_132 = arith.constant 0 : index
    %c0_133 = arith.constant 0 : index
    %217 = vector.load %arg17[%216, %c0_132, %c0_133] : memref<8x8x32xf32, #tpu.memory_space<vmem>>, vector<1x8x32xf32>
    %218 = vector.shape_cast %217 : vector<1x8x32xf32> to vector<8x32xf32>
    %219 = arith.addf %215, %218 : vector<8x32xf32>
    %220 = arith.index_cast %c1_i32_129 : i32 to index
    %c0_134 = arith.constant 0 : index
    %c0_135 = arith.constant 0 : index
    %221 = vector.load %arg18[%220, %c0_134, %c0_135] : memref<8x8x32xf32, #tpu.memory_space<vmem>>, vector<1x8x32xf32>
    %222 = vector.shape_cast %221 : vector<1x8x32xf32> to vector<8x32xf32>
    %223 = arith.mulf %222, %219 : vector<8x32xf32>
    %224 = arith.index_cast %c1_i32_129 : i32 to index
    %c0_136 = arith.constant 0 : index
    %c0_137 = arith.constant 0 : index
    %225 = vector.load %arg18[%224, %c0_136, %c0_137] : memref<8x8x32xf32, #tpu.memory_space<vmem>>, vector<1x8x32xf32>
    %226 = vector.shape_cast %225 : vector<1x8x32xf32> to vector<8x32xf32>
    %227 = vector.shape_cast %223 : vector<8x32xf32> to vector<1x8x32xf32>
    tpu.vector_store %arg18[%224, %c0_136, %c0_137], %227 {strides = array<i32>} : memref<8x8x32xf32, #tpu.memory_space<vmem>>, vector<1x8x32xf32>,
    %c2_i32 = arith.constant 2 : i32
    %228 = arith.index_cast %c2_i32 : i32 to index
    %c0_138 = arith.constant 0 : index
    %c0_139 = arith.constant 0 : index
    %229 = vector.load %arg16[%228, %c0_138, %c0_139] : memref<8x8x32xf32, #tpu.memory_space<vmem>>, vector<1x8x32xf32>
    %230 = vector.shape_cast %229 : vector<1x8x32xf32> to vector<8x32xf32>
    %231 = arith.mulf %230, %219 : vector<8x32xf32>
    %232 = arith.index_cast %c2_i32 : i32 to index
    %c0_140 = arith.constant 0 : index
    %c0_141 = arith.constant 0 : index
    %233 = vector.load %arg17[%232, %c0_140, %c0_141] : memref<8x8x32xf32, #tpu.memory_space<vmem>>, vector<1x8x32xf32>
    %234 = vector.shape_cast %233 : vector<1x8x32xf32> to vector<8x32xf32>
    %235 = arith.addf %231, %234 : vector<8x32xf32>
    %236 = arith.index_cast %c2_i32 : i32 to index
    %c0_142 = arith.constant 0 : index
    %c0_143 = arith.constant 0 : index
    %237 = vector.load %arg18[%236, %c0_142, %c0_143] : memref<8x8x32xf32, #tpu.memory_space<vmem>>, vector<1x8x32xf32>
    %238 = vector.shape_cast %237 : vector<1x8x32xf32> to vector<8x32xf32>
    %239 = arith.mulf %238, %235 : vector<8x32xf32>
    %240 = arith.index_cast %c2_i32 : i32 to index
    %c0_144 = arith.constant 0 : index
    %c0_145 = arith.constant 0 : index
    %241 = vector.load %arg18[%240, %c0_144, %c0_145] : memref<8x8x32xf32, #tpu.memory_space<vmem>>, vector<1x8x32xf32>
    %242 = vector.shape_cast %241 : vector<1x8x32xf32> to vector<8x32xf32>
    %243 = vector.shape_cast %239 : vector<8x32xf32> to vector<1x8x32xf32>
    tpu.vector_store %arg18[%240, %c0_144, %c0_145], %243 {strides = array<i32>} : memref<8x8x32xf32, #tpu.memory_space<vmem>>, vector<1x8x32xf32>,
    %c3_i32 = arith.constant 3 : i32
    %244 = arith.index_cast %c3_i32 : i32 to index
    %c0_146 = arith.constant 0 : index
    %c0_147 = arith.constant 0 : index
    %245 = vector.load %arg16[%244, %c0_146, %c0_147] : memref<8x8x32xf32, #tpu.memory_space<vmem>>, vector<1x8x32xf32>
    %246 = vector.shape_cast %245 : vector<1x8x32xf32> to vector<8x32xf32>
    %247 = arith.mulf %246, %235 : vector<8x32xf32>
    %248 = arith.index_cast %c3_i32 : i32 to index
    %c0_148 = arith.constant 0 : index
    %c0_149 = arith.constant 0 : index
    %249 = vector.load %arg17[%248, %c0_148, %c0_149] : memref<8x8x32xf32, #tpu.memory_space<vmem>>, vector<1x8x32xf32>
    %250 = vector.shape_cast %249 : vector<1x8x32xf32> to vector<8x32xf32>
    %251 = arith.addf %247, %250 : vector<8x32xf32>
    %252 = arith.index_cast %c3_i32 : i32 to index
    %c0_150 = arith.constant 0 : index
    %c0_151 = arith.constant 0 : index
    %253 = vector.load %arg18[%252, %c0_150, %c0_151] : memref<8x8x32xf32, #tpu.memory_space<vmem>>, vector<1x8x32xf32>
    %254 = vector.shape_cast %253 : vector<1x8x32xf32> to vector<8x32xf32>
    %255 = arith.mulf %254, %251 : vector<8x32xf32>
    %256 = arith.index_cast %c3_i32 : i32 to index
    %c0_152 = arith.constant 0 : index
    %c0_153 = arith.constant 0 : index
    %257 = vector.load %arg18[%256, %c0_152, %c0_153] : memref<8x8x32xf32, #tpu.memory_space<vmem>>, vector<1x8x32xf32>
    %258 = vector.shape_cast %257 : vector<1x8x32xf32> to vector<8x32xf32>
    %259 = vector.shape_cast %255 : vector<8x32xf32> to vector<1x8x32xf32>
    tpu.vector_store %arg18[%256, %c0_152, %c0_153], %259 {strides = array<i32>} : memref<8x8x32xf32, #tpu.memory_space<vmem>>, vector<1x8x32xf32>,
    %c4_i32 = arith.constant 4 : i32
    %260 = arith.index_cast %c4_i32 : i32 to index
    %c0_154 = arith.constant 0 : index
    %c0_155 = arith.constant 0 : index
    %261 = vector.load %arg16[%260, %c0_154, %c0_155] : memref<8x8x32xf32, #tpu.memory_space<vmem>>, vector<1x8x32xf32>
    %262 = vector.shape_cast %261 : vector<1x8x32xf32> to vector<8x32xf32>
    %263 = arith.mulf %262, %251 : vector<8x32xf32>
    %264 = arith.index_cast %c4_i32 : i32 to index
    %c0_156 = arith.constant 0 : index
    %c0_157 = arith.constant 0 : index
    %265 = vector.load %arg17[%264, %c0_156, %c0_157] : memref<8x8x32xf32, #tpu.memory_space<vmem>>, vector<1x8x32xf32>
    %266 = vector.shape_cast %265 : vector<1x8x32xf32> to vector<8x32xf32>
    %267 = arith.addf %263, %266 : vector<8x32xf32>
    %268 = arith.index_cast %c4_i32 : i32 to index
    %c0_158 = arith.constant 0 : index
    %c0_159 = arith.constant 0 : index
    %269 = vector.load %arg18[%268, %c0_158, %c0_159] : memref<8x8x32xf32, #tpu.memory_space<vmem>>, vector<1x8x32xf32>
    %270 = vector.shape_cast %269 : vector<1x8x32xf32> to vector<8x32xf32>
    %271 = arith.mulf %270, %267 : vector<8x32xf32>
    %272 = arith.index_cast %c4_i32 : i32 to index
    %c0_160 = arith.constant 0 : index
    %c0_161 = arith.constant 0 : index
    %273 = vector.load %arg18[%272, %c0_160, %c0_161] : memref<8x8x32xf32, #tpu.memory_space<vmem>>, vector<1x8x32xf32>
    %274 = vector.shape_cast %273 : vector<1x8x32xf32> to vector<8x32xf32>
    %275 = vector.shape_cast %271 : vector<8x32xf32> to vector<1x8x32xf32>
    tpu.vector_store %arg18[%272, %c0_160, %c0_161], %275 {strides = array<i32>} : memref<8x8x32xf32, #tpu.memory_space<vmem>>, vector<1x8x32xf32>,
    %c5_i32 = arith.constant 5 : i32
    %276 = arith.index_cast %c5_i32 : i32 to index
    %c0_162 = arith.constant 0 : index
    %c0_163 = arith.constant 0 : index
    %277 = vector.load %arg16[%276, %c0_162, %c0_163] : memref<8x8x32xf32, #tpu.memory_space<vmem>>, vector<1x8x32xf32>
    %278 = vector.shape_cast %277 : vector<1x8x32xf32> to vector<8x32xf32>
    %279 = arith.mulf %278, %267 : vector<8x32xf32>
    %280 = arith.index_cast %c5_i32 : i32 to index
    %c0_164 = arith.constant 0 : index
    %c0_165 = arith.constant 0 : index
    %281 = vector.load %arg17[%280, %c0_164, %c0_165] : memref<8x8x32xf32, #tpu.memory_space<vmem>>, vector<1x8x32xf32>
    %282 = vector.shape_cast %281 : vector<1x8x32xf32> to vector<8x32xf32>
    %283 = arith.addf %279, %282 : vector<8x32xf32>
    %284 = arith.index_cast %c5_i32 : i32 to index
    %c0_166 = arith.constant 0 : index
    %c0_167 = arith.constant 0 : index
    %285 = vector.load %arg18[%284, %c0_166, %c0_167] : memref<8x8x32xf32, #tpu.memory_space<vmem>>, vector<1x8x32xf32>
    %286 = vector.shape_cast %285 : vector<1x8x32xf32> to vector<8x32xf32>
    %287 = arith.mulf %286, %283 : vector<8x32xf32>
    %288 = arith.index_cast %c5_i32 : i32 to index
    %c0_168 = arith.constant 0 : index
    %c0_169 = arith.constant 0 : index
    %289 = vector.load %arg18[%288, %c0_168, %c0_169] : memref<8x8x32xf32, #tpu.memory_space<vmem>>, vector<1x8x32xf32>
    %290 = vector.shape_cast %289 : vector<1x8x32xf32> to vector<8x32xf32>
    %291 = vector.shape_cast %287 : vector<8x32xf32> to vector<1x8x32xf32>
    tpu.vector_store %arg18[%288, %c0_168, %c0_169], %291 {strides = array<i32>} : memref<8x8x32xf32, #tpu.memory_space<vmem>>, vector<1x8x32xf32>,
    %c6_i32 = arith.constant 6 : i32
    %292 = arith.index_cast %c6_i32 : i32 to index
    %c0_170 = arith.constant 0 : index
    %c0_171 = arith.constant 0 : index
    %293 = vector.load %arg16[%292, %c0_170, %c0_171] : memref<8x8x32xf32, #tpu.memory_space<vmem>>, vector<1x8x32xf32>
    %294 = vector.shape_cast %293 : vector<1x8x32xf32> to vector<8x32xf32>
    %295 = arith.mulf %294, %283 : vector<8x32xf32>
    %296 = arith.index_cast %c6_i32 : i32 to index
    %c0_172 = arith.constant 0 : index
    %c0_173 = arith.constant 0 : index
    %297 = vector.load %arg17[%296, %c0_172, %c0_173] : memref<8x8x32xf32, #tpu.memory_space<vmem>>, vector<1x8x32xf32>
    %298 = vector.shape_cast %297 : vector<1x8x32xf32> to vector<8x32xf32>
    %299 = arith.addf %295, %298 : vector<8x32xf32>
    %300 = arith.index_cast %c6_i32 : i32 to index
    %c0_174 = arith.constant 0 : index
    %c0_175 = arith.constant 0 : index
    %301 = vector.load %arg18[%300, %c0_174, %c0_175] : memref<8x8x32xf32, #tpu.memory_space<vmem>>, vector<1x8x32xf32>
    %302 = vector.shape_cast %301 : vector<1x8x32xf32> to vector<8x32xf32>
    %303 = arith.mulf %302, %299 : vector<8x32xf32>
    %304 = arith.index_cast %c6_i32 : i32 to index
    %c0_176 = arith.constant 0 : index
    %c0_177 = arith.constant 0 : index
    %305 = vector.load %arg18[%304, %c0_176, %c0_177] : memref<8x8x32xf32, #tpu.memory_space<vmem>>, vector<1x8x32xf32>
    %306 = vector.shape_cast %305 : vector<1x8x32xf32> to vector<8x32xf32>
    %307 = vector.shape_cast %303 : vector<8x32xf32> to vector<1x8x32xf32>
    tpu.vector_store %arg18[%304, %c0_176, %c0_177], %307 {strides = array<i32>} : memref<8x8x32xf32, #tpu.memory_space<vmem>>, vector<1x8x32xf32>,
    %c7_i32_178 = arith.constant 7 : i32
    %308 = arith.index_cast %c7_i32_178 : i32 to index
    %c0_179 = arith.constant 0 : index
    %c0_180 = arith.constant 0 : index
    %309 = vector.load %arg16[%308, %c0_179, %c0_180] : memref<8x8x32xf32, #tpu.memory_space<vmem>>, vector<1x8x32xf32>
    %310 = vector.shape_cast %309 : vector<1x8x32xf32> to vector<8x32xf32>
    %311 = arith.mulf %310, %299 : vector<8x32xf32>
    %312 = arith.index_cast %c7_i32_178 : i32 to index
    %c0_181 = arith.constant 0 : index
    %c0_182 = arith.constant 0 : index
    %313 = vector.load %arg17[%312, %c0_181, %c0_182] : memref<8x8x32xf32, #tpu.memory_space<vmem>>, vector<1x8x32xf32>
    %314 = vector.shape_cast %313 : vector<1x8x32xf32> to vector<8x32xf32>
    %315 = arith.addf %311, %314 : vector<8x32xf32>
    %316 = arith.index_cast %c7_i32_178 : i32 to index
    %c0_183 = arith.constant 0 : index
    %c0_184 = arith.constant 0 : index
    %317 = vector.load %arg18[%316, %c0_183, %c0_184] : memref<8x8x32xf32, #tpu.memory_space<vmem>>, vector<1x8x32xf32>
    %318 = vector.shape_cast %317 : vector<1x8x32xf32> to vector<8x32xf32>
    %319 = arith.mulf %318, %315 : vector<8x32xf32>
    %320 = arith.index_cast %c7_i32_178 : i32 to index
    %c0_185 = arith.constant 0 : index
    %c0_186 = arith.constant 0 : index
    %321 = vector.load %arg18[%320, %c0_185, %c0_186] : memref<8x8x32xf32, #tpu.memory_space<vmem>>, vector<1x8x32xf32>
    %322 = vector.shape_cast %321 : vector<1x8x32xf32> to vector<8x32xf32>
    %323 = vector.shape_cast %319 : vector<8x32xf32> to vector<1x8x32xf32>
    tpu.vector_store %arg18[%320, %c0_185, %c0_186], %323 {strides = array<i32>} : memref<8x8x32xf32, #tpu.memory_space<vmem>>, vector<1x8x32xf32>,
    %c8_i32 = arith.constant 8 : i32
    %c0_187 = arith.constant 0 : index
    %c0_188 = arith.constant 0 : index
    %c0_189 = arith.constant 0 : index
    %324 = vector.load %arg18[%c0_187, %c0_188, %c0_189] : memref<8x8x32xf32, #tpu.memory_space<vmem>>, vector<8x8x32xf32>
    %325 = vector.extract_strided_slice %324 {offsets = [0, 0, 0], sizes = [8, 1, 32], strides = [1, 1, 1]} : vector<8x8x32xf32> to vector<8x1x32xf32>
    %326 = vector.shape_cast %325 : vector<8x1x32xf32> to vector<8x32xf32>
    %327 = vector.extract_strided_slice %324 {offsets = [0, 1, 0], sizes = [8, 1, 32], strides = [1, 1, 1]} : vector<8x8x32xf32> to vector<8x1x32xf32>
    %328 = vector.shape_cast %327 : vector<8x1x32xf32> to vector<8x32xf32>
    %329 = arith.addf %326, %328 : vector<8x32xf32>
    %330 = vector.extract_strided_slice %324 {offsets = [0, 2, 0], sizes = [8, 1, 32], strides = [1, 1, 1]} : vector<8x8x32xf32> to vector<8x1x32xf32>
    %331 = vector.shape_cast %330 : vector<8x1x32xf32> to vector<8x32xf32>
    %332 = arith.addf %329, %331 : vector<8x32xf32>
    %333 = vector.extract_strided_slice %324 {offsets = [0, 3, 0], sizes = [8, 1, 32], strides = [1, 1, 1]} : vector<8x8x32xf32> to vector<8x1x32xf32>
    %334 = vector.shape_cast %333 : vector<8x1x32xf32> to vector<8x32xf32>
    %335 = arith.addf %332, %334 : vector<8x32xf32>
    %336 = vector.extract_strided_slice %324 {offsets = [0, 4, 0], sizes = [8, 1, 32], strides = [1, 1, 1]} : vector<8x8x32xf32> to vector<8x1x32xf32>
    %337 = vector.shape_cast %336 : vector<8x1x32xf32> to vector<8x32xf32>
    %338 = arith.addf %335, %337 : vector<8x32xf32>
    %339 = vector.extract_strided_slice %324 {offsets = [0, 5, 0], sizes = [8, 1, 32], strides = [1, 1, 1]} : vector<8x8x32xf32> to vector<8x1x32xf32>
    %340 = vector.shape_cast %339 : vector<8x1x32xf32> to vector<8x32xf32>
    %341 = arith.addf %338, %340 : vector<8x32xf32>
    %342 = vector.extract_strided_slice %324 {offsets = [0, 6, 0], sizes = [8, 1, 32], strides = [1, 1, 1]} : vector<8x8x32xf32> to vector<8x1x32xf32>
    %343 = vector.shape_cast %342 : vector<8x1x32xf32> to vector<8x32xf32>
    %344 = arith.addf %341, %343 : vector<8x32xf32>
    %345 = vector.extract_strided_slice %324 {offsets = [0, 7, 0], sizes = [8, 1, 32], strides = [1, 1, 1]} : vector<8x8x32xf32> to vector<8x1x32xf32>
    %346 = vector.shape_cast %345 : vector<8x1x32xf32> to vector<8x32xf32>
    %347 = arith.addf %344, %346 : vector<8x32xf32>
    %c0_190 = arith.constant 0 : index
    %c0_191 = arith.constant 0 : index
    %348 = vector.load %arg14[%c0_190, %c0_191] : memref<1x32xf32, #tpu.memory_space<vmem>>, vector<1x32xf32>
    %349 = vector.broadcast %348 : vector<1x32xf32> to vector<8x32xf32>
    %350 = arith.mulf %349, %65 : vector<8x32xf32>
    %351 = arith.addf %347, %350 : vector<8x32xf32>
    %c0_192 = arith.constant 0 : index
    %c0_193 = arith.constant 0 : index
    %352 = vector.load %arg9[%c0_192, %c0_193] : memref<32x32xf32, #tpu.memory_space<vmem>>, vector<32x32xf32>
    %cst_194 = arith.constant dense<0.000000e+00> : vector<8x32xf32>
    %353 = tpu.matmul %27, %352, %cst_194 {dimension_numbers = #tpu.dot_dimension_numbers<[1], [0], [0], [1], [0, 0, 1, 1], [], []>} : vector<8x32xf32>, vector<32x32xf32>, vector<8x32xf32> -> vector<8x32xf32>
    %c0_195 = arith.constant 0 : index
    %c0_196 = arith.constant 0 : index
    %354 = vector.load %arg10[%c0_195, %c0_196] : memref<1x32xf32, #tpu.memory_space<vmem>>, vector<1x32xf32>
    %355 = vector.broadcast %354 : vector<1x32xf32> to vector<8x32xf32>
    %356 = arith.addf %353, %355 : vector<8x32xf32>
    %357 = arith.negf %356 : vector<8x32xf32>
    %358 = math.exp %357 : vector<8x32xf32>
    %cst_197 = arith.constant 1.000000e+00 : f32
    %359 = vector.broadcast %cst_197 : f32 to vector<8x32xf32>
    %360 = arith.addf %359, %358 : vector<8x32xf32>
    %361 = arith.divf %359, %360 : vector<8x32xf32>
    %362 = arith.mulf %361, %351 : vector<8x32xf32>
    %cst_198 = arith.constant 5.000000e-01 : f32
    %363 = vector.broadcast %cst_198 : f32 to vector<8x32xf32>
    %364 = arith.mulf %363, %362 : vector<8x32xf32>
    %cst_199 = arith.constant 0.707106769 : f32
    %365 = vector.broadcast %cst_199 : f32 to vector<8x32xf32>
    %366 = arith.mulf %362, %365 : vector<8x32xf32>
    %367 = math.erf %366 : vector<8x32xf32>
    %cst_200 = arith.constant 1.000000e+00 : f32
    %368 = vector.broadcast %cst_200 : f32 to vector<8x32xf32>
    %369 = arith.addf %368, %367 : vector<8x32xf32>
    %370 = arith.mulf %364, %369 : vector<8x32xf32>
    %c0_201 = arith.constant 0 : index
    %c0_202 = arith.constant 0 : index
    %371 = vector.load %arg11[%c0_201, %c0_202] : memref<32x16xf32, #tpu.memory_space<vmem>>, vector<32x16xf32>
    %cst_203 = arith.constant dense<0.000000e+00> : vector<8x16xf32>
    %372 = tpu.matmul %370, %371, %cst_203 {dimension_numbers = #tpu.dot_dimension_numbers<[1], [0], [0], [1], [0, 0, 1, 1], [], []>} : vector<8x32xf32>, vector<32x16xf32>, vector<8x16xf32> -> vector<8x16xf32>
    %c0_204 = arith.constant 0 : index
    %c0_205 = arith.constant 0 : index
    %373 = vector.load %arg12[%c0_204, %c0_205] : memref<1x16xf32, #tpu.memory_space<vmem>>, vector<1x16xf32>
    %374 = vector.broadcast %373 : vector<1x16xf32> to vector<8x16xf32>
    %375 = arith.addf %372, %374 : vector<8x16xf32>
    %376 = arith.addf %20, %375 : vector<8x16xf32>
    %377 = arith.mulf %376, %376 : vector<8x16xf32>
    %cst_206 = arith.constant dense<0.000000e+00> : vector<8xf32>
    %378 = vector.multi_reduction <add>, %377, %cst_206 [1] : vector<8x16xf32> to vector<8xf32>
    %379 = vector.shape_cast %378 : vector<8xf32> to vector<8x1xf32>
    %cst_207 = arith.constant 1.600000e+01 : f32
    %380 = vector.broadcast %cst_207 : f32 to vector<8x1xf32>
    %381 = arith.divf %379, %380 : vector<8x1xf32>
    %382 = math.sqrt %381 : vector<8x1xf32>
    %cst_208 = arith.constant 9.99999974E-6 : f32
    %383 = vector.broadcast %cst_208 : f32 to vector<8x1xf32>
    %384 = arith.addf %382, %383 : vector<8x1xf32>
    %385 = tpu.reciprocal %384 {approx = true} : vector<8x1xf32> -> vector<8x1xf32>
    %386 = arith.mulf %384, %385 : vector<8x1xf32>
    %cst_209 = arith.constant 2.000000e+00 : f32
    %387 = vector.broadcast %cst_209 : f32 to vector<8x1xf32>
    %388 = arith.subf %387, %386 : vector<8x1xf32>
    %389 = arith.mulf %385, %388 : vector<8x1xf32>
    %390 = vector.broadcast %1 : f32 to vector<8x1xf32>
    %391 = arith.mulf %390, %389 : vector<8x1xf32>
    %392 = vector.broadcast %391 : vector<8x1xf32> to vector<8x16xf32>
    %393 = arith.mulf %376, %392 : vector<8x16xf32>
    %394 = vector.shape_cast %393 : vector<8x16xf32> to vector<1x8x16xf32>
    %c0_210 = arith.constant 0 : index
    %c0_211 = arith.constant 0 : index
    %c0_212 = arith.constant 0 : index
    %395 = vector.load %arg15[%c0_210, %c0_211, %c0_212] : memref<1x8x16xf32, #tpu.memory_space<vmem>>, vector<1x8x16xf32>
    tpu.vector_store %arg15[%c0_210, %c0_211, %c0_212], %394 {strides = array<i32>} : memref<1x8x16xf32, #tpu.memory_space<vmem>>, vector<1x8x16xf32>,
    return
  }
  func.func @transform_0(%arg0: i32) -> i32 {
    %c0_i32 = arith.constant 0 : i32
    %c0_i32_0 = arith.constant 0 : i32
    return %c0_i32 : i32
  }
  func.func @transform_1(%arg0: i32) -> (i32, i32, i32) {
    %c0_i32 = arith.constant 0 : i32
    %c0_i32_0 = arith.constant 0 : i32
    %c0_i32_1 = arith.constant 0 : i32
    return %arg0, %c0_i32, %c0_i32_0 : i32, i32, i32
  }
  func.func @transform_2(%arg0: i32) -> (i32, i32) {
    %c0_i32 = arith.constant 0 : i32
    %c0_i32_0 = arith.constant 0 : i32
    %c0_i32_1 = arith.constant 0 : i32
    return %c0_i32, %c0_i32_0 : i32, i32
  }
  func.func @transform_3(%arg0: i32) -> (i32, i32) {
    %c0_i32 = arith.constant 0 : i32
    %c0_i32_0 = arith.constant 0 : i32
    %c0_i32_1 = arith.constant 0 : i32
    return %c0_i32, %c0_i32_0 : i32, i32
  }
  func.func @transform_4(%arg0: i32) -> (i32, i32) {
    %c0_i32 = arith.constant 0 : i32
    %c0_i32_0 = arith.constant 0 : i32
    %c0_i32_1 = arith.constant 0 : i32
    return %c0_i32, %c0_i32_0 : i32, i32
  }
  func.func @transform_5(%arg0: i32) -> (i32, i32) {
    %c0_i32 = arith.constant 0 : i32
    %c0_i32_0 = arith.constant 0 : i32
    %c0_i32_1 = arith.constant 0 : i32
    return %c0_i32, %c0_i32_0 : i32, i32
  }
  func.func @transform_6(%arg0: i32) -> (i32, i32) {
    %c0_i32 = arith.constant 0 : i32
    %c0_i32_0 = arith.constant 0 : i32
    %c0_i32_1 = arith.constant 0 : i32
    return %c0_i32, %c0_i32_0 : i32, i32
  }
  func.func @transform_7(%arg0: i32) -> (i32, i32) {
    %c0_i32 = arith.constant 0 : i32
    %c0_i32_0 = arith.constant 0 : i32
    %c0_i32_1 = arith.constant 0 : i32
    return %c0_i32, %c0_i32_0 : i32, i32
  }
  func.func @transform_8(%arg0: i32) -> (i32, i32) {
    %c0_i32 = arith.constant 0 : i32
    %c0_i32_0 = arith.constant 0 : i32
    %c0_i32_1 = arith.constant 0 : i32
    return %c0_i32, %c0_i32_0 : i32, i32
  }
  func.func @transform_9(%arg0: i32) -> (i32, i32) {
    %c0_i32 = arith.constant 0 : i32
    %c0_i32_0 = arith.constant 0 : i32
    %c0_i32_1 = arith.constant 0 : i32
    return %c0_i32, %c0_i32_0 : i32, i32
  }
  func.func @transform_10(%arg0: i32) -> (i32, i32) {
    %c0_i32 = arith.constant 0 : i32
    %c0_i32_0 = arith.constant 0 : i32
    %c0_i32_1 = arith.constant 0 : i32
    return %c0_i32, %c0_i32_0 : i32, i32
  }
  func.func @transform_11(%arg0: i32) -> (i32, i32) {
    %c0_i32 = arith.constant 0 : i32
    %c0_i32_0 = arith.constant 0 : i32
    %c0_i32_1 = arith.constant 0 : i32
    return %c0_i32, %c0_i32_0 : i32, i32
  }
  func.func @transform_12(%arg0: i32) -> (i32, i32) {
    %c0_i32 = arith.constant 0 : i32
    %c0_i32_0 = arith.constant 0 : i32
    %c0_i32_1 = arith.constant 0 : i32
    return %c0_i32, %c0_i32_0 : i32, i32
  }
  func.func @transform_13(%arg0: i32) -> (i32, i32) {
    %c0_i32 = arith.constant 0 : i32
    %c0_i32_0 = arith.constant 0 : i32
    %c0_i32_1 = arith.constant 0 : i32
    return %c0_i32, %c0_i32_0 : i32, i32
  }
  func.func @transform_14(%arg0: i32) -> (i32, i32, i32) {
    %c0_i32 = arith.constant 0 : i32
    %c0_i32_0 = arith.constant 0 : i32
    %c0_i32_1 = arith.constant 0 : i32
    return %arg0, %c0_i32, %c0_i32_0 : i32, i32, i32
  }
}

</mosaic_0001>

<bundles_post_ra>
// kernel: tpu_custom_call.1
= control target key start
LH: loop header
LB: loop body
LE: loop exit
PB: predicated region body
PF: predicated region fallthrough
CT: control target
= control target key end

     0   :  { %s3549_s0 = inlined_call_operand.hbm [shape: f32[2], index: 0, kind: input, shape index: {}]   ;;  %s3550_s1 = inlined_call_operand.vmem [shape: f32[2,8,16], index: 1, kind: input, shape index: {}]   ;;  %s3551_s2 = inlined_call_operand.hbm [shape: f32[16,64], index: 2, kind: input, shape index: {}]   ;;  %s3552_s3 = inlined_call_operand.hbm [shape: f32[1,64], index: 3, kind: input, shape index: {}]   ;;  %s3553_s4 = inlined_call_operand.hbm [shape: f32[3,32], index: 4, kind: input, shape index: {}]   ;;  %s3554_s5 = inlined_call_operand.hbm [shape: f32[1,32], index: 5, kind: input, shape index: {}]   ;;  %s3555_s6 = inlined_call_operand.hbm [shape: f32[32,544], index: 6, kind: input, shape index: {}]   ;;  %s3556_s7 = inlined_call_operand.hbm [shape: f32[1,544], index: 7, kind: input, shape index: {}]   ;;  %s3557_s8 = inlined_call_operand.vmem [shape: f32[32,32], index: 8, kind: input, shape index: {}]   ;;  %s3558_s9 = inlined_call_operand.hbm [shape: f32[1,32], index: 9, kind: input, shape index: {}]   ;;  %s3559_s10 = inlined_call_operand.vmem [shape: f32[32,16], index: 10, kind: input, shape index: {}]   ;;  %s3560_s11 = inlined_call_operand.vmem [shape: f32[1,16], index: 11, kind: input, shape index: {}]   ;;  %s3561_s12 = inlined_call_operand.vmem [shape: f32[8,32], index: 12, kind: input, shape index: {}]   ;;  %s3562_s13 = inlined_call_operand.vmem [shape: f32[1,32], index: 13, kind: input, shape index: {}]   ;;  %s3563_s14 = inlined_call_operand.hbm [shape: f32[2,8,16], index: 14, kind: output, shape index: {}]  }
   0x1   :  { %3570 = sst [smem:[#allocation32_spill]] %s3549_s0 }
   0x2   :  { %3571 = sst [smem:[#allocation33_spill]] %s3551_s2 }
   0x3   :  { %3572 = sst [smem:[#allocation34_spill]] %s3552_s3 }
   0x4   :  { %3573 = sst [smem:[#allocation35_spill]] %s3554_s5 }
   0x5   :  { %19 = vsyncpa [#allocation8], 0 }
   0x6   :  { %20 = vsyncpa [#allocation6], 0 }
   0x7   :  { %21 = vsyncpa [#allocation11], 0 }
   0x8   :  { %22 = vsyncpa [#allocation14], 0 }
   0x9   :  { %23 = vsyncpa [#allocation17], 0 }
   0xa   :  { %24 = vsyncpa [#allocation7], 0 }
   0xb   :  { %26 = vsyncpa [#allocation7 + $0x1], 0  ;;  %s2774_s29 = smov 0   ;;  %s2776_s30 = smov 0  }
   0xc   :  { %s2778_s15 = smov 0   ;;  %s2780_s16 = smov 0  }
   0xd LB: > { %3574 = sst [smem:[#allocation26_spill]] %s2669_s29  ;;  %s2795_s17 = sadd.s32 4294967295, %s2681_s16   ;;  %s2681_s16 = sphi %s2780_s16, %s3591_s16   ;;  %s2677_s15 = sphi %s2778_s15, %s3593_s15   ;;  %s2673_s30 = sphi %s2776_s30, %s3595_s30   ;;  %s2669_s29 = sphi %s2774_s29, %s3594_s29  }
   0xe   : > { %3575 = sst [smem:[#allocation27_spill]] %s2677_s15  ;;  %s2156_s18 = sadd.s32 4294967294, %s2681_s16  }
   0xf   : > { %3576 = sst [smem:[#allocation28_spill]] %s2681_s16  ;;  %s2799_s19 = sadd.s32 1, %s2681_s16  }
  0x10   : > { %3577 = sst [smem:[#allocation29_spill]] %s2799_s19  ;;  %s338_s20 = sadd.s32 1, %s2677_s15 }
  0x11   : > { %s335_s21 = ssub.s32 %s2681_s16, %s2799_s19  ;;  %p348_p0 = scmp.ne.s32.totalorder %s2677_s15, %s2673_s30 }
  0x12   : > { %p336_p1 = scmp.eq.s32.totalorder %s335_s21, 0  ;;  %p349_p2 = scmp.eq.s32.totalorder %s2795_s17, 1 }
  0x13   : > { %p354_p3 = scmp.ne.s32.totalorder %s2673_s30, %s2669_s29  ;;  %p355_p4 = scmp.eq.s32.totalorder %s2156_s18, 1 }
  0x14   : > { %s2810_s22 = scalar_select %p336_p1, %s2677_s15, %s338_s20  }
  0x15   : > { %p2812_p5 = por %p349_p2, %p348_p0  ;;  %p2816_p6 = por %p355_p4, %p354_p3 }
  0x16   : > { %3578 = sst [smem:[#allocation30_spill]] %s2810_s22  ;;  %p2157_p7 = scmp.ge.s32.totalorder %s2681_s16, 1 }
  0x17   : > { %s3580_s24 = scalar_select %p2816_p6, 1, 0 }
  0x18   : > { %p362_p8 = scmp.lt.s32.totalorder %s2681_s16, 3  ;;  %p2257_p9 = scmp.eq.s32.totalorder %s2795_s17, 0 }
  0x19   : > { %3581 = sst [smem:[#allocation31_spill]] %s3580_s24  ;;  %s2683_s18 = smov [#allocation10]  }
  0x1a   : > { %p2823_p10 = pnand %p2157_p7, %p362_p8  ;;  %s3583_s3 = sld [smem:[#allocation34_spill]] }
  0x1b   : > { %s400_s20 = sshll.u32 %s2683_s18, 4  ;;  %s3584_s5 = sld [smem:[#allocation35_spill]]  ;;  %s401_s20 = int_to_ptr.vmem [resolvable:$true] %s400_s20 }
  0x1c   : > { %p2228_p11 = pneg %p2823_p10  ;;  %s2684_s18 = smov [#allocation13]  }
  0x1d   : > { %s424_s24 = sshll.u32 %s2684_s18, 4  ;;  %s3586_s0 = sld [smem:[#allocation32_spill]]  ;;  %s425_s24 = int_to_ptr.vmem [resolvable:$true] %s424_s24 }
  0x1e   : > { %p2837_p12 = pnand %p2257_p9, %p2228_p11  ;;  %s2685_s29 = smov [#allocation16]  }
  0x1f   : > { %s450_s16 = sshll.u32 %s2685_s29, 4  ;;  %s2686_s26 = smov [#allocation5]   ;;  %s451_s16 = int_to_ptr.vmem [resolvable:$true] %s450_s16 }
  0x20   : > { %s398_s28 = sshll.u32 %s3583_s3, 4  ;;  %s448_s3 = sshll.u32 %s3556_s7, 4  ;;  %s399_s28 = int_to_ptr.hbm [resolvable:$true] %s398_s28  ;;  %s449_s3 = int_to_ptr.hbm [resolvable:$true] %s448_s3 }
  0x21   : > { %s422_s15 = sshll.u32 %s3584_s5, 4  ;;  %s3587_s2 = sld [smem:[#allocation33_spill]]  ;;  %s423_s15 = int_to_ptr.hbm [resolvable:$true] %s422_s15 }
  0x22   : > { %2237 = dma.hbm_to_vmem [thread:$0]  (!%p2837_p12), %s399_s28, 16, %s401_s20, [#allocation11]  }
  0x23   : > { %2243 = dma.hbm_to_vmem [thread:$0]  (!%p2837_p12), %s423_s15, 16, %s425_s24, [#allocation14]  }
  0x24   : > { %s374_s5 = sshll.u32 %s3586_s0, 4  ;;  %s2687_s15 = smov [#allocation9]   ;;  %s375_s5 = int_to_ptr.hbm [resolvable:$true] %s374_s5 }
  0x25   : > { %2249 = dma.hbm_to_vmem [thread:$0]  (!%p2837_p12), %s449_s3, 80, %s451_s16, [#allocation17]  }
  0x26   : > { %2231 = dma.hbm_to_smem (!%p2837_p12), %s375_s5, 16, %s2686_s26, [#allocation8]  }
  0x27   : > { %s383_s20 = sshll.u32 %s3587_s2, 4  ;;  %s385_s24 = sshll.u32 %s2687_s15, 4  ;;  %s384_s20 = int_to_ptr.hbm [resolvable:$true] %s383_s20  ;;  %s386_s24 = int_to_ptr.vmem [resolvable:$true] %s385_s24 }
  0x28   : > { %s410_s29 = sshll.u32 %s3553_s4, 4  ;;  %s2688_s21 = smov 128   ;;  %s411_s29 = int_to_ptr.hbm [resolvable:$true] %s410_s29 }
  0x29   : > { %s2689_s0 = smov 8   ;;  %s2690_s3 = smov [#allocation12]  }
  0x2a   : > { %2234 = dma.hbm_to_vmem [thread:$0]  (!%p2837_p12), %s384_s20, 256, %s386_s24, [#allocation6], %s2688_s21, %s2688_s21, %s2689_s0  }
  0x2b   : > { %s412_s5 = sshll.u32 %s2690_s3, 4  ;;  %s433_s27 = sshll.u32 %s3555_s6, 4  ;;  %s413_s5 = int_to_ptr.vmem [resolvable:$true] %s412_s5  ;;  %s434_s27 = int_to_ptr.hbm [resolvable:$true] %s433_s27 }
  0x2c   : > { %2240 = dma.hbm_to_vmem [thread:$0]  (!%p2837_p12), %s411_s29, 64, %s413_s5, [#allocation11]  }
  0x2d   : > { %s2691_s28 = smov [#allocation15]   ;;  %s463_s2 = sshll.u32 %s3558_s9, 4  ;;  %s464_s2 = int_to_ptr.hbm [resolvable:$true] %s463_s2 }
  0x2e   : > { %s435_s15 = sshll.u32 %s2691_s28, 4  ;;  %s2692_s0 = smov 640   ;;  %s436_s15 = int_to_ptr.vmem [resolvable:$true] %s435_s15 }
  0x2f   : > { %s2693_s20 = smov 40   ;;  %s2694_s24 = smov [#allocation18]  }
  0x30   : > { %2246 = dma.hbm_to_vmem [thread:$0]  (!%p2837_p12), %s434_s27, 2560, %s436_s15, [#allocation14], %s2692_s0, %s2692_s0, %s2693_s20  }
  0x31   : > { %s465_s21 = sshll.u32 %s2694_s24, 4  ;;  %497 = sbr.rel (%p2823_p10) target bundleno = 1179 (0x49b), region = 76  ;;  %s466_s21 = int_to_ptr.vmem [resolvable:$true] %s465_s21 }
  0x32   : > { %2252 = dma.hbm_to_vmem [thread:$0]  (!%p2837_p12), %s464_s2, 16, %s466_s21, [#allocation17]  }
  0x36   : > { %2644 = dma.done.wait (%p2257_p9), [#allocation8], 16  }
  0x37   : > { %2646 = vsyncadd (%p2257_p9), [#allocation8], 4294967280 }
  0x38   : > { %2648 = dma.done.wait (%p2257_p9), [#allocation6], 256  }
  0x39   : > { %2650 = vsyncadd (%p2257_p9), [#allocation6], 4294967040 }
  0x3a   : > { %2652 = dma.done.wait (%p2257_p9), [#allocation11], 80  }
  0x3b   : > { %2654 = vsyncadd (%p2257_p9), [#allocation11], 4294967216 }
  0x3c   : > { %2656 = dma.done.wait (%p2257_p9), [#allocation14], 2576  }
  0x3d   : > { %2658 = vsyncadd (%p2257_p9), [#allocation14], 4294964720 }
  0x3e   : > { %2660 = dma.done.wait (%p2257_p9), [#allocation17], 96  }
  0x3f   : > { %2662 = vsyncadd (%p2257_p9), [#allocation17], 4294967200 }
  0x40   : > { %539 = sfence }
  0x41   : > { %p579_p13 = scmp.lt.s32.totalorder %s2795_s17, 1  ;;  %vm587_vm0 = vcmask 130048   ;;  %v2695_v3 = vmov 16.0   ;;  %v620_v4 = vld [vmem:[#allocation9 + $0x8] sm:$0xff]  ;;  %v619_v5 = vld [vmem:[#allocation9] sm:$0xff]  ;;  %s583_s5 = sld [smem:[#allocation5]]  ;;  %v648_v35 = vlaneseq }
  0x42   : > { %2338 = vrcp.f32 %v2695_v3  ;;  %642 = vmatpush.msra.mxu0 %v620_v4  ;;  %v711_v32 = vld [vmem:[#allocation15 + $0x78] sm:$0xff]  ;;  %v712_v33 = vld [vmem:[#allocation15 + $0x80] sm:$0xff]  ;;  %v713_v34 = vld [vmem:[#allocation15 + $0x88] sm:$0xff]  ;;  %s2696_s16 = smov 96   ;;  %vm728_vm9 = vcmask 261120   ;;  %vm854_vm11 = vcmask 253952  }
  0x43   : > { %s580_s2 = scalar_select %p579_p13, %s2795_s17, 1  ;;  %744 = vmatpush.msra.mxu1 %v711_v32  ;;  %764 = vmatpush.msra.mxu2 %v712_v33  ;;  %v714_v36 = vld [vmem:[#allocation15 + $0x90] sm:$0xff]  ;;  %v707_v38 = vld [vmem:[#allocation15 + $0x58] sm:$0xff]  ;;  %v708_v39 = vld [vmem:[#allocation15 + $0x60] sm:$0xff]  ;;  %v649_v48 = vshrl.u32 %v648_v35, 7  ;;  %vm1876_vm13 = vcmask 1041409  }
  0x44   : > { %643 = vmatpush.msra.mxu0 %v619_v5  ;;  %v706_v37 = vld [vmem:[#allocation15 + $0x50] sm:$0xff]  ;;  %784 = vmatpush.msra.mxu3 %v713_v34  ;;  %v709_v40 = vld [vmem:[#allocation15 + $0x68] sm:$0xff]  ;;  %v703_v43 = vld [vmem:[#allocation15 + $0x38] sm:$0xff]  ;;  %s2697_s24 = smov 32   ;;  %s2698_s21 = smov 64   ;;  %vm1879_vm14 = vcmask 1042434  }
  0x45   : > { %s2177_s19 = sshll.u32 %s580_s2, 3  ;;  %v701_v41 = vld [vmem:[#allocation15 + $0x28] sm:$0xff]  ;;  %745 = vmatpush.msra.mxu1 %v706_v37  ;;  %765 = vmatpush.msra.mxu2 %v707_v38  ;;  %v702_v42 = vld [vmem:[#allocation15 + $0x30] sm:$0xff]  ;;  %v704_v44 = vld [vmem:[#allocation15 + $0x40] sm:$0xff]  ;;  %vm656_vm4 = vcmp.ge.s32.totalorder %v649_v48, 1  ;;  %vm670_vm5 = vcmp.lt.s32.totalorder %v649_v48, 7 }
  0x46   : > { %s582_s3 = scalar_lea.vmem %s3550_s1, %s2177_s19  ;;  %804 = vmatpush.msrb.mxu0 %v714_v36  ;;  %v2322_v45 = vld [vmem:[#allocation10] ss:$0 sm:$0xff]  ;;  %785 = vmatpush.msra.mxu3 %v708_v39  ;;  %v696_v46 = vld [vmem:[#allocation15] sm:$0xff]  ;;  %v697_v47 = vld [vmem:[#allocation15 + $0x8] sm:$0xff]  ;;  %s2178_s22 = sld [smem:[#allocation5 + $0x1]] }
  0x47   : > { %v585_v0 = vld [vmem:[%s582_s3] sm:$0xff]  ;;  %v616_v28 = vstv %s583_s5  ;;  %746 = vmatpush.msra.mxu1 %v701_v41  ;;  %766 = vmatpush.msra.mxu2 %v702_v42  ;;  %v698_v49 = vld [vmem:[#allocation15 + $0x10] sm:$0xff]  ;;  %v699_v50 = vld [vmem:[#allocation15 + $0x18] sm:$0xff]  ;;  %s576_s0 = sand.u32 1, %s2673_s30   ;;  %s2191_s2 = sshll.u32 %s2795_s17, 3 }
  0x48   : > { %v586_v1 = vmul.f32 %v585_v0, %v585_v0  ;;  %v2339_v6 = vpop.eup %2338  ;;  %805 = vmatpush.msrb.mxu0 %v709_v40  ;;  %786 = vmatpush.msra.mxu3 %v703_v43  ;;  %v2324_v53 = vld [vmem:[#allocation12] ss:$0 sm:$0xff]  ;;  %v2323_v56 = vld [vmem:[#allocation13] ss:$0 sm:$0xff]  ;;  %v2325_v57 = vld [vmem:[#allocation12 + $0x1] ss:$0 sm:$0xff] }
  0x49   : > { %v592_v7 = vmul.f32 16.0, %v2339_v6  ;;  %vm596_vm1 = vweird.f32 %v2339_v6  ;;  %747 = vmatpush.msra.mxu1 %v696_v46  ;;  %767 = vmatpush.msra.mxu2 %v697_v47  ;;  %v2326_v60 = vld [vmem:[#allocation12 + $0x2] ss:$0 sm:$0xff]  ;;  %v710_v3 = vld [vmem:[#allocation15 + $0x70] sm:$0xff]  ;;  %v705_v5 = vld [vmem:[#allocation15 + $0x48] sm:$0xff]  ;;  %s2176_s20 = sshll.u32 %s576_s0, 3 }
  0x4a   : > { %v588_v2 = vsel %vm587_vm0, %v586_v1, 0.0  ;;  %806 = vmatpush.msrb.mxu0 %v704_v44  ;;  %787 = vmatpush.msra.mxu3 %v698_v49  ;;  %v2328_v42 = vld [vmem:[%s3561_s12] ss:$0 sm:$0xff]  ;;  %v2329_v47 = vld [vmem:[%s3561_s12 + $0x1] ss:$0 sm:$0xff]  ;;  %s2001_s3 = scalar_lea.sflag [#allocation7], %s576_s0 }
  0x4b   : > { %589 = vadd.xlane.f32.xlu0 %v588_v2  ;;  %v593_v8 = vsub.f32 1.0, %v592_v7  ;;  %v715_v2 = vld [vmem:[#allocation15 + $0x98] sm:$0xff]  ;;  %v700_v7 = vld [vmem:[#allocation15 + $0x20] sm:$0xff]  ;;  %s2619_s28 = scalar_lea.hbm %s3563_s14, 16 }
  0x4c   : > { %807 = vmatpush.msrb.mxu0 %v699_v50  ;;  %824 = vmatpush.msrb.mxu1 %v715_v2 }
  0x4d   : > { %v594_v9 = vmul.f32 %v2339_v6, %v593_v8  ;;  %v1818_v8 = vld [vmem:[%s3557_s8 + $0x18] sm:$0xff] }
  0x4e   : > { %825 = vmatpush.msrb.mxu1 %v710_v3  ;;  %1840 = vmatpush.msrb.mxu2 %v1818_v8 }
  0x4f   : > { %v595_v10 = vadd.f32 %v2339_v6, %v594_v9  ;;  %v1817_v9 = vld [vmem:[%s3557_s8 + $0x10] sm:$0xff] }
  0x50   : > { %826 = vmatpush.msrb.mxu1 %v705_v5  ;;  %1841 = vmatpush.msrb.mxu2 %v1817_v9 }
  0x51   : > { %v2903_v11 = vsel %vm596_vm1, %v2339_v6, %v595_v10  ;;  %v1816_v10 = vld [vmem:[%s3557_s8 + $0x8] sm:$0xff]  ;;  %vm1882_vm1 = vcmask 1043459  }
  0x52   : > { %827 = vmatpush.msrb.mxu1 %v700_v7  ;;  %1842 = vmatpush.msrb.mxu2 %v1816_v10  ;;  %v2333_v10 = vld [vmem:[%s3561_s12 + $0x5] ss:$0 sm:$0xff] }
  0xbe   : > { %v590_v12 = vpop.xlane.xlu0 %589 }
  0xbf   : > { %v598_v13 = vmul.f32 %v2903_v11, %v590_v12 }
  0xc1   : > { %2340 = vrsqrt.f32 %v598_v13  ;;  %vm606_vm2 = vcmp.eq.f32.partialorder %v598_v13, inf  ;;  %v609_v21 = vand.u32 2147483648, %v598_v13  ;;  %vm608_vm3 = vcmp.eq.f32.partialorder %v598_v13, 0.0 }
  0xc7   : > { %v2341_v14 = vpop.eup %2340 }
  0xc8   : > { %v600_v15 = vmul.f32 %v2341_v14, %v598_v13 }
  0xca   : > { %v601_v16 = vmul.f32 %v2341_v14, %v600_v15 }
  0xcc   : > { %v602_v17 = vmul.f32 0.5, %v601_v16 }
  0xce   : > { %v603_v18 = vsub.f32 1.5, %v602_v17 }
  0xd0   : > { %v604_v19 = vmul.f32 %v2341_v14, %v603_v18 }
  0xd2   : > { %v605_v20 = vmul.f32 %v604_v19, %v598_v13 }
  0xd4   : > { %v607_v22 = vsel %vm606_vm2, %v598_v13, %v605_v20  ;;  %v1815_v13 = vld [vmem:[%s3557_s8] sm:$0xff]  ;;  %vm1885_vm2 = vcmask 1044484  }
  0xd5   : > { %v610_v23 = vsel %vm608_vm3, %v609_v21, %v607_v22  ;;  %1843 = vmatpush.msrb.mxu2 %v1815_v13  ;;  %v2334_v13 = vld [vmem:[%s3561_s12 + $0x6] ss:$0 sm:$0xff]  ;;  %vm1888_vm3 = vcmask 1045509  }
  0xd6   : > { %v611_v24 = vadd.f32 1e-05, %v610_v23 }
  0xd8   : > { %2342 = vrcp.f32 %v611_v24 }
  0xde   : > { %v2343_v25 = vpop.eup %2342 }
  0xdf   : > { %v613_v26 = vmul.f32 %v2343_v25, %v611_v24 }
  0xe1   : > { %v614_v27 = vsub.f32 2.0, %v613_v26  ;;  %v716_v26 = vld [vmem:[#allocation16] sm:$0x1f] }
  0xe2   : > { %v720_v34 = vperm.slane %v716_v26, 2  ;;  %v722_v39 = vperm.slane %v716_v26, 4  ;;  %v719_v44 = vperm.slane %v716_v26, 1 }
  0xe3   : > { %v615_v29 = vmul.f32 %v2343_v25, %v614_v27  ;;  %v718_v27 = vperm.slane %v716_v26, 0 }
  0xe5   : > { %v617_v30 = vmul.f32 %v616_v28, %v615_v29  ;;  %v721_v28 = vperm.slane %v716_v26, 3 }
  0xe7   : > { %v2906_v31 = vmul.f32 %v617_v30, %v585_v0 }
  0xe9   : > { %2179 = vmatmul.msk.f32.vlgmr.msra.gmra.mxu0 %vm587_vm0, %v2906_v31 }
 0x166   : > { %v645_v51 = vpop.f32.mrf.mxu0 }
 0x167   : > { %v646_v52 = vadd.f32 %v2322_v45, %v645_v51  ;;  %v2330_v51 = vld [vmem:[%s3561_s12 + $0x2] ss:$0 sm:$0xff] }
 0x169   : > { %v655_v54 = vrot.slane %v646_v52, 7  ;;  %v668_v55 = vrot.slane %v646_v52, 1  ;;  %1824 = vrot.lane.b32.xlu0 %v646_v52, %s2696_s16  ;;  %v666_v63 = vmul.f32 %v2325_v57, %v646_v52  ;;  %v2331_v52 = vld [vmem:[%s3561_s12 + $0x3] ss:$0 sm:$0xff] }
 0x16b   : > { %v659_v58 = vsel %vm656_vm4, %v655_v54, 0.0  ;;  %v672_v61 = vsel %vm670_vm5, %v668_v55, 0.0  ;;  %vm1891_vm5 = vcmask 1046534  }
 0x16c   : > { %v662_v59 = vmul.f32 %v2324_v53, %v659_v58  ;;  %v675_v1 = vmul.f32 %v2326_v60, %v672_v61  ;;  %v2332_v53 = vld [vmem:[%s3561_s12 + $0x4] ss:$0 sm:$0xff] }
 0x16e   : > { %v663_v62 = vadd.f32 %v2323_v56, %v662_v59 }
 0x170   : > { %v667_v0 = vadd.f32 %v666_v63, %v663_v62 }
 0x172   : > { %v676_v4 = vadd.f32 %v675_v1, %v667_v0 }
 0x174   : > { %v2180_v6 = vmul.f32 -1.442695, %v676_v4 }
 0x176   : > { %2344 = vpow2.f32 %v2180_v6 }
 0x17c   : > { %v2345_v12 = vpop.eup %2344 }
 0x17d   : > { %v680_v14 = vadd.f32 1.0, %v2345_v12 }
 0x17f   : > { %2346 = vrcp.f32 %v680_v14  ;;  %v692_v18 = vand.u32 2147483648, %v680_v14  ;;  %v690_v20 = vand.u32 2147483647, %v680_v14  ;;  %vm686_vm7 = vweird.f32 %v680_v14 }
 0x181   : > { %v693_v22 = vor.u32 1.1754944e-38, %v692_v18  ;;  %vm691_vm10 = vcmp.eq.f32.partialorder %v690_v20, 8.507059e+37 }
 0x185   : > { %v2347_v15 = vpop.eup %2346 }
 0x186   : > { %v682_v16 = vmul.f32 %v2347_v15, %v680_v14  ;;  %vm687_vm6 = vweird.f32 %v2347_v15  ;;  %v2335_v14 = vld [vmem:[%s3561_s12 + $0x7] ss:$0 sm:$0xff] }
 0x187   : > { %vm688_vm8 = vmor %vm686_vm7, %vm687_vm6  ;;  %vm1894_vm6 = vcmask 1047559  }
 0x188   : > { %v683_v17 = vsub.f32 1.0, %v682_v16 }
 0x18a   : > { %v684_v19 = vmul.f32 %v2347_v15, %v683_v17 }
 0x18c   : > { %v685_v21 = vadd.f32 %v2347_v15, %v684_v19 }
 0x18e   : > { %v689_v23 = vsel %vm688_vm8, %v2347_v15, %v685_v21 }
 0x18f   : > { %v2923_v24 = vsel %vm691_vm10, %v693_v22, %v689_v23 }
 0x190   : > { %2181 = vmatmul.msk.f32.vlgmr.msra.gmra.mxu1 %vm728_vm9, %v2923_v24  ;;  %2182 = vmatmul.msk.f32.vlgmr.msra.gmra.mxu2 %vm728_vm9, %v2923_v24 }
 0x191   : > { %2183 = vmatmul.msk.f32.vlgmr.msra.gmra.mxu3 %vm728_vm9, %v2923_v24  ;;  %2184 = vmatmul.msk.f32.vlgmr.msrb.gmra.mxu0 %vm728_vm9, %v2923_v24 }
 0x198   : > { %2185 = vmatmul.msk.f32.vlgmr.msrb.gmra.mxu1 %vm728_vm9, %v2923_v24 }
 0x1db   : > { %v1825_v25 = vpop.permute.xlu0 %1824 }
 0x1dc   : > { %2186 = vmatmul.msk.f32.vlgmr.msrb.gmra.mxu2 %vm728_vm9, %v1825_v25 }
 0x20d   : > { %v749_v29 = vpop.f32.mrf.mxu1 }
 0x20e   : > { %v750_v30 = vadd.f32 %v749_v29, %v718_v27  ;;  %v809_v32 = vpop.f32.mrf.mxu0 }
 0x20f   : > { %v2936_v33 = vadd.f32 %v809_v32, %v721_v28 }
 0x210   : > { %1121 = vrot.lane.b32.xlu2 %v750_v30, %s2697_s24  ;;  %939 = vrot.lane.b32.xlu1 %v750_v30, %s2696_s16 }
 0x211   : > { %1247 = vst.msk [vmem:[#allocation4 + $0x4] sm:$0x1] %vm854_vm11, %v2936_v33  ;;  %v1311_v35 = vperm.slane %v2936_v33, 0  ;;  %v1233_v36 = vrot.slane %v2936_v33, 1  ;;  %v1234_v37 = vrot.slane %v2936_v33, 2  ;;  %v1235_v38 = vrot.slane %v2936_v33, 3 }
 0x212   : > { %v1236_v40 = vrot.slane %v2936_v33, 4  ;;  %v1237_v43 = vrot.slane %v2936_v33, 5  ;;  %v1238_v48 = vrot.slane %v2936_v33, 6 }
 0x213   : > { %1406 = vrot.lane.b32.xlu0 %v1311_v35, %s2698_s21  ;;  %1248 = vst.msk [vmem:[#allocation4 + $0xc] sm:$0x1] %vm854_vm11, %v1233_v36  ;;  %v769_v49 = vpop.f32.mrf.mxu2  ;;  %v1312_v58 = vperm.slane %v1233_v36, 0  ;;  %v1313_v15 = vperm.slane %v1234_v37, 0 }
 0x214   : > { %v789_v41 = vpop.f32.mrf.mxu3  ;;  %1249 = vst.msk [vmem:[#allocation4 + $0x14] sm:$0x1] %vm854_vm11, %v1234_v37  ;;  %v2986_v57 = vadd.f32 %v769_v49, %v719_v44  ;;  %v1315_v44 = vperm.slane %v1236_v40, 0 }
 0x215   : > { %v2954_v45 = vadd.f32 %v789_v41, %v720_v34  ;;  %v829_v46 = vpop.f32.mrf.mxu1  ;;  %1250 = vst.msk [vmem:[#allocation4 + $0x1c] sm:$0x1] %vm854_vm11, %v1235_v38  ;;  %v1314_v34 = vperm.slane %v1235_v38, 0 }
 0x216   : > { %v830_v50 = vadd.f32 %v829_v46, %v722_v39  ;;  %1251 = vst.msk [vmem:[#allocation4 + $0x24] sm:$0x1] %vm854_vm11, %v1236_v40 }
 0x217   : > { %902 = vst.msk [vmem:[#allocation4] sm:$0x1] %vm854_vm11, %v2954_v45  ;;  %v888_v54 = vrot.slane %v2954_v45, 1  ;;  %v889_v49 = vrot.slane %v2954_v45, 2  ;;  %v891_v40 = vrot.slane %v2954_v45, 4 }
 0x218   : > { %v2979_v55 = vmul.f32 %v830_v50, %v2923_v24  ;;  %v834_v56 = vsub.f32 0.0, %v830_v50  ;;  %1493 = vrot.lane.b32.xlu2 %v1311_v35, %s2697_s24  ;;  %1034 = vrot.lane.b32.xlu1 %v750_v30, %s2698_s21  ;;  %1252 = vst.msk [vmem:[#allocation4 + $0x2c] sm:$0x1] %vm854_vm11, %v1237_v43  ;;  %v890_v50 = vrot.slane %v2954_v45, 3 }
 0x219   : > { %1253 = vst.msk [vmem:[#allocation4 + $0x34] sm:$0x1] %vm854_vm11, %v1238_v48 }
 0x21a   : > { %v836_v59 = vmul.f32 %v2328_v42, %v834_v56  ;;  %v863_v60 = vmul.f32 %v2979_v55, %v750_v30  ;;  %v912_v61 = vmul.f32 %v2329_v47, %v834_v56  ;;  %v1008_v62 = vmul.f32 %v2330_v51, %v834_v56  ;;  %903 = vst.msk [vmem:[#allocation4 + $0x8] sm:$0x1] %vm854_vm11, %v888_v54 }
 0x21b   : > { %v1095_v63 = vmul.f32 %v2331_v52, %v834_v56  ;;  %v1182_v0 = vmul.f32 %v2332_v53, %v834_v56  ;;  %1495 = vrot.lane.b32.xlu0 %v1312_v58, %s2697_s24  ;;  %v2998_v2 = vmul.f32 %v2979_v55, %v2986_v57  ;;  %v1257_v18 = vmul.f32 %v2333_v10, %v834_v56 }
 0x21c   : > { %v837_v1 = vmul.f32 1.442695, %v836_v59  ;;  %v865_v3 = vrot.slane %v863_v60, 1  ;;  %v866_v4 = vrot.slane %v863_v60, 2  ;;  %879 = vst.msk [vmem:[#allocation3] sm:$0x1] %vm854_vm11, %v863_v60  ;;  %v1353_v21 = vmul.f32 %v2334_v13, %v834_v56 }
 0x21d   : > { %v913_v5 = vmul.f32 1.442695, %v912_v61  ;;  %v1009_v6 = vmul.f32 1.442695, %v1008_v62  ;;  %v1096_v7 = vmul.f32 1.442695, %v1095_v63  ;;  %v1440_v22 = vmul.f32 %v2335_v14, %v834_v56 }
 0x21e   : > { %2348 = vpow2.f32 %v837_v1  ;;  %v867_v8 = vrot.slane %v863_v60, 3  ;;  %v1183_v9 = vmul.f32 1.442695, %v1182_v0  ;;  %v868_v12 = vrot.slane %v863_v60, 4  ;;  %1224 = vst.msk [vmem:[#allocation3 + $0x4] sm:$0x1] %vm854_vm11, %v2998_v2 }
 0x21f   : > { %2350 = vpow2.f32 %v913_v5  ;;  %880 = vst.msk [vmem:[#allocation3 + $0x8] sm:$0x1] %vm854_vm11, %v865_v3  ;;  %v869_v16 = vrot.slane %v863_v60, 5  ;;  %v870_v17 = vrot.slane %v863_v60, 6  ;;  %v871_v20 = vrot.slane %v863_v60, 7 }
 0x220   : > { %1408 = vrot.lane.b32.xlu2 %v1312_v58, %s2698_s21  ;;  %1319 = vrot.lane.b32.xlu1 %v1311_v35, %s2696_s16  ;;  %2352 = vpow2.f32 %v1009_v6  ;;  %881 = vst.msk [vmem:[#allocation3 + $0x10] sm:$0x1] %vm854_vm11, %v866_v4  ;;  %v1258_v26 = vmul.f32 1.442695, %v1257_v18  ;;  %v1354_v28 = vmul.f32 1.442695, %v1353_v21 }
 0x221   : > { %2354 = vpow2.f32 %v1096_v7  ;;  %882 = vst.msk [vmem:[#allocation3 + $0x18] sm:$0x1] %vm854_vm11, %v867_v8  ;;  %v1210_v30 = vrot.slane %v2998_v2, 1  ;;  %v1441_v32 = vmul.f32 1.442695, %v1440_v22  ;;  %v1211_v35 = vrot.slane %v2998_v2, 2 }
 0x222   : > { %2356 = vpow2.f32 %v1183_v9  ;;  %883 = vst.msk [vmem:[#allocation3 + $0x20] sm:$0x1] %vm854_vm11, %v868_v12  ;;  %v1212_v36 = vrot.slane %v2998_v2, 3  ;;  %v1213_v37 = vrot.slane %v2998_v2, 4  ;;  %v1214_v38 = vrot.slane %v2998_v2, 5 }
 0x223   : > { %1497 = vrot.lane.b32.xlu0 %v1313_v15, %s2697_s24  ;;  %884 = vst.msk [vmem:[#allocation3 + $0x28] sm:$0x1] %vm854_vm11, %v869_v16  ;;  %2358 = vpow2.f32 %v1258_v26  ;;  %v1215_v39 = vrot.slane %v2998_v2, 6  ;;  %v1216_v41 = vrot.slane %v2998_v2, 7  ;;  %v892_v51 = vrot.slane %v2954_v45, 5 }
 0x224   : > { %v3018_v19 = vpop.eup %2348  ;;  %885 = vst.msk [vmem:[#allocation3 + $0x30] sm:$0x1] %vm854_vm11, %v870_v17  ;;  %2360 = vpow2.f32 %v1354_v28  ;;  %v893_v52 = vrot.slane %v2954_v45, 6  ;;  %v894_v53 = vrot.slane %v2954_v45, 7  ;;  %v1316_v56 = vperm.slane %v1237_v43, 0 }
 0x225   : > { %855 = vst.msk [vmem:[#allocation2] sm:$0x1] %vm854_vm11, %v3018_v19  ;;  %v3023_v23 = vpop.eup %2350  ;;  %2362 = vpow2.f32 %v1441_v32  ;;  %v840_v59 = vrot.slane %v3018_v19, 1  ;;  %v1317_v1 = vperm.slane %v1238_v48, 0  ;;  %v841_v3 = vrot.slane %v3018_v19, 2 }
 0x226   : > { %v3026_v25 = vpop.eup %2352  ;;  %886 = vst.msk [vmem:[#allocation3 + $0x38] sm:$0x1] %vm854_vm11, %v871_v20  ;;  %v916_v43 = vrot.slane %v3023_v23, 1  ;;  %v917_v4 = vrot.slane %v3023_v23, 2  ;;  %v966_v9 = vperm.slane %v2954_v45, 0  ;;  %v842_v12 = vrot.slane %v3018_v19, 3 }
 0x227   : > { %v3029_v27 = vpop.eup %2354  ;;  %930 = vst.msk [vmem:[#allocation2 + $0x1] sm:$0x1] %vm854_vm11, %v3023_v23  ;;  %v1012_v60 = vrot.slane %v3026_v25, 1  ;;  %v1013_v5 = vrot.slane %v3026_v25, 2  ;;  %v918_v13 = vrot.slane %v3023_v23, 3  ;;  %v1014_v14 = vrot.slane %v3026_v25, 3 }
 0x228   : > { %1410 = vrot.lane.b32.xlu2 %v1313_v15, %s2698_s21  ;;  %1321 = vrot.lane.b32.xlu1 %v1312_v58, %s2696_s16  ;;  %v3034_v29 = vpop.eup %2356  ;;  %1026 = vst.msk [vmem:[#allocation2 + $0x2] sm:$0x1] %vm854_vm11, %v3026_v25  ;;  %v1239_v58 = vrot.slane %v2936_v33, 7  ;;  %v1099_v61 = vrot.slane %v3029_v27, 1  ;;  %v1100_v48 = vrot.slane %v3029_v27, 2  ;;  %v967_v20 = vperm.slane %v888_v54, 0 }
 0x229   : > { %1113 = vst.msk [vmem:[#allocation2 + $0x3] sm:$0x1] %vm854_vm11, %v3029_v27  ;;  %v3060_v42 = vpop.eup %2358  ;;  %v1186_v62 = vrot.slane %v3034_v29, 1  ;;  %v1187_v6 = vrot.slane %v3034_v29, 2  ;;  %v1188_v16 = vrot.slane %v3034_v29, 3  ;;  %v843_v22 = vrot.slane %v3018_v19, 4 }
 0x22a   : > { %1200 = vst.msk [vmem:[#allocation2 + $0x4] sm:$0x1] %vm854_vm11, %v3034_v29  ;;  %v3065_v46 = vpop.eup %2360  ;;  %v1261_v63 = vrot.slane %v3060_v42, 1  ;;  %v1262_v7 = vrot.slane %v3060_v42, 2  ;;  %v1263_v17 = vrot.slane %v3060_v42, 3  ;;  %v919_v26 = vrot.slane %v3023_v23, 4 }
 0x22b   : > { %1499 = vrot.lane.b32.xlu0 %v1314_v34, %s2697_s24  ;;  %1225 = vst.msk [vmem:[#allocation3 + $0xc] sm:$0x1] %vm854_vm11, %v1210_v30  ;;  %v3068_v47 = vpop.eup %2362  ;;  %v1357_v0 = vrot.slane %v3065_v46, 1  ;;  %v1358_v8 = vrot.slane %v3065_v46, 2  ;;  %v1359_v18 = vrot.slane %v3065_v46, 3  ;;  %v1015_v28 = vrot.slane %v3026_v25, 4 }
 0x22c   : > { %1226 = vst.msk [vmem:[#allocation3 + $0x14] sm:$0x1] %vm854_vm11, %v1211_v35  ;;  %v1444_v2 = vrot.slane %v3068_v47, 1  ;;  %v1445_v10 = vrot.slane %v3068_v47, 2  ;;  %v1446_v21 = vrot.slane %v3068_v47, 3  ;;  %v1102_v54 = vrot.slane %v3029_v27, 4 }
 0x22d   : > { %1227 = vst.msk [vmem:[#allocation3 + $0x1c] sm:$0x1] %vm854_vm11, %v1212_v36  ;;  %v1189_v30 = vrot.slane %v3034_v29, 4  ;;  %v1264_v32 = vrot.slane %v3060_v42, 4  ;;  %v968_v35 = vperm.slane %v889_v49, 0  ;;  %v1447_v36 = vrot.slane %v3068_v47, 4 }
 0x22e   : > { %1228 = vst.msk [vmem:[#allocation3 + $0x24] sm:$0x1] %vm854_vm11, %v1213_v37  ;;  %v844_v37 = vrot.slane %v3018_v19, 5 }
 0x22f   : > { %1229 = vst.msk [vmem:[#allocation3 + $0x2c] sm:$0x1] %vm854_vm11, %v1214_v38  ;;  %v1016_v38 = vrot.slane %v3026_v25, 5 }
 0x230   : > { %1325 = vrot.lane.b32.xlu2 %v1314_v34, %s2696_s16  ;;  %1323 = vrot.lane.b32.xlu1 %v1313_v15, %s2696_s16  ;;  %1230 = vst.msk [vmem:[#allocation3 + $0x34] sm:$0x1] %vm854_vm11, %v1215_v39  ;;  %v1101_v15 = vrot.slane %v3029_v27, 3  ;;  %v1103_v39 = vrot.slane %v3029_v27, 5 }
 0x231   : > { %1231 = vst.msk [vmem:[#allocation3 + $0x3c] sm:$0x1] %vm854_vm11, %v1216_v41  ;;  %v1190_v41 = vrot.slane %v3034_v29, 5 }
 0x232   : > { %1275 = vst.msk [vmem:[#allocation2 + $0x5] sm:$0x1] %vm854_vm11, %v3060_v42 }
 0x233   : > { %1501 = vrot.lane.b32.xlu0 %v1315_v44, %s2697_s24  ;;  %1371 = vst.msk [vmem:[#allocation2 + $0x6] sm:$0x1] %vm854_vm11, %v3065_v46 }
 0x234   : > { %1458 = vst.msk [vmem:[#allocation2 + $0x7] sm:$0x1] %vm854_vm11, %v3068_v47 }
 0x235   : > { %904 = vst.msk [vmem:[#allocation4 + $0x10] sm:$0x1] %vm854_vm11, %v889_v49  ;;  %v1361_v49 = vrot.slane %v3065_v46, 5 }
 0x236   : > { %905 = vst.msk [vmem:[#allocation4 + $0x18] sm:$0x1] %vm854_vm11, %v890_v50 }
 0x237   : > { %906 = vst.msk [vmem:[#allocation4 + $0x20] sm:$0x1] %vm854_vm11, %v891_v40 }
 0x238   : > { %1414 = vrot.lane.b32.xlu2 %v1315_v44, %s2698_s21  ;;  %1412 = vrot.lane.b32.xlu1 %v1314_v34, %s2698_s21  ;;  %907 = vst.msk [vmem:[#allocation4 + $0x28] sm:$0x1] %vm854_vm11, %v892_v51  ;;  %v1360_v34 = vrot.slane %v3065_v46, 4 }
 0x239   : > { %908 = vst.msk [vmem:[#allocation4 + $0x30] sm:$0x1] %vm854_vm11, %v893_v52 }
 0x23a   : > { %909 = vst.msk [vmem:[#allocation4 + $0x38] sm:$0x1] %vm854_vm11, %v894_v53 }
 0x23b   : > { %1503 = vrot.lane.b32.xlu0 %v1316_v56, %s2697_s24  ;;  %1254 = vst.msk [vmem:[#allocation4 + $0x3c] sm:$0x1] %vm854_vm11, %v1239_v58 }
 0x23c   : > { %856 = vst.msk [vmem:[#allocation2 + $0x8] sm:$0x1] %vm854_vm11, %v840_v59  ;;  %v1448_v59 = vrot.slane %v3068_v47, 5 }
 0x23d   : > { %931 = vst.msk [vmem:[#allocation2 + $0x9] sm:$0x1] %vm854_vm11, %v916_v43  ;;  %v845_v43 = vrot.slane %v3018_v19, 6 }
 0x23e   : > { %1027 = vst.msk [vmem:[#allocation2 + $0xa] sm:$0x1] %vm854_vm11, %v1012_v60  ;;  %v921_v60 = vrot.slane %v3023_v23, 6 }
 0x23f   : > { %1114 = vst.msk [vmem:[#allocation2 + $0xb] sm:$0x1] %vm854_vm11, %v1099_v61  ;;  %v1017_v61 = vrot.slane %v3026_v25, 6 }
 0x240   : > { %1416 = vrot.lane.b32.xlu2 %v1316_v56, %s2698_s21  ;;  %1327 = vrot.lane.b32.xlu1 %v1315_v44, %s2696_s16  ;;  %1201 = vst.msk [vmem:[#allocation2 + $0xc] sm:$0x1] %vm854_vm11, %v1186_v62  ;;  %v1265_v44 = vrot.slane %v3060_v42, 5  ;;  %v1191_v62 = vrot.slane %v3034_v29, 6 }
 0x241   : > { %1276 = vst.msk [vmem:[#allocation2 + $0xd] sm:$0x1] %vm854_vm11, %v1261_v63  ;;  %v1266_v63 = vrot.slane %v3060_v42, 6 }
 0x242   : > { %1372 = vst.msk [vmem:[#allocation2 + $0xe] sm:$0x1] %vm854_vm11, %v1357_v0  ;;  %v1362_v0 = vrot.slane %v3065_v46, 6 }
 0x243   : > { %1505 = vrot.lane.b32.xlu0 %v1317_v1, %s2697_s24  ;;  %1459 = vst.msk [vmem:[#allocation2 + $0xf] sm:$0x1] %vm854_vm11, %v1444_v2 }
 0x244   : > { %857 = vst.msk [vmem:[#allocation2 + $0x10] sm:$0x1] %vm854_vm11, %v841_v3  ;;  %v1449_v3 = vrot.slane %v3068_v47, 6 }
 0x245   : > { %932 = vst.msk [vmem:[#allocation2 + $0x11] sm:$0x1] %vm854_vm11, %v917_v4 }
 0x246   : > { %1028 = vst.msk [vmem:[#allocation2 + $0x12] sm:$0x1] %vm854_vm11, %v1013_v5 }
 0x247   : > { %1115 = vst.msk [vmem:[#allocation2 + $0x13] sm:$0x1] %vm854_vm11, %v1100_v48 }
 0x248   : > { %1418 = vrot.lane.b32.xlu2 %v1317_v1, %s2698_s21  ;;  %1329 = vrot.lane.b32.xlu1 %v1316_v56, %s2696_s16  ;;  %1202 = vst.msk [vmem:[#allocation2 + $0x14] sm:$0x1] %vm854_vm11, %v1187_v6  ;;  %v969_v56 = vperm.slane %v890_v50, 0  ;;  %v1104_v50 = vrot.slane %v3029_v27, 6 }
 0x249   : > { %1277 = vst.msk [vmem:[#allocation2 + $0x15] sm:$0x1] %vm854_vm11, %v1262_v7 }
 0x24a   : > { %1373 = vst.msk [vmem:[#allocation2 + $0x16] sm:$0x1] %vm854_vm11, %v1358_v8 }
 0x24b   : > { %1061 = vrot.lane.b32.xlu0 %v966_v9, %s2698_s21  ;;  %1460 = vst.msk [vmem:[#allocation2 + $0x17] sm:$0x1] %vm854_vm11, %v1445_v10  ;;  %v971_v10 = vperm.slane %v892_v51, 0  ;;  %v1105_v51 = vrot.slane %v3029_v27, 7  ;;  %v1363_v27 = vrot.slane %v3065_v46, 7 }
 0x24c   : > { %858 = vst.msk [vmem:[#allocation2 + $0x18] sm:$0x1] %vm854_vm11, %v842_v12 }
 0x24d   : > { %933 = vst.msk [vmem:[#allocation2 + $0x19] sm:$0x1] %vm854_vm11, %v918_v13  ;;  %v846_v13 = vrot.slane %v3018_v19, 7  ;;  %v1192_v19 = vrot.slane %v3034_v29, 7  ;;  %v973_v29 = vperm.slane %v894_v53, 0 }
 0x24e   : > { %1029 = vst.msk [vmem:[#allocation2 + $0x1a] sm:$0x1] %vm854_vm11, %v1014_v14  ;;  %v922_v14 = vrot.slane %v3023_v23, 7 }
 0x24f   : > { %1116 = vst.msk [vmem:[#allocation2 + $0x1b] sm:$0x1] %vm854_vm11, %v1101_v15  ;;  %v1018_v15 = vrot.slane %v3026_v25, 7  ;;  %v1267_v25 = vrot.slane %v3060_v42, 7 }
 0x250   : > { %1284 = vrot.lane.b32.xlu2 %v2986_v57, %s2696_s16  ;;  %1331 = vrot.lane.b32.xlu1 %v1317_v1, %s2696_s16  ;;  %1203 = vst.msk [vmem:[#allocation2 + $0x1c] sm:$0x1] %vm854_vm11, %v1188_v16  ;;  %v970_v1 = vperm.slane %v891_v40, 0 }
 0x251   : > { %1278 = vst.msk [vmem:[#allocation2 + $0x1d] sm:$0x1] %vm854_vm11, %v1263_v17  ;;  %v1450_v17 = vrot.slane %v3068_v47, 7 }
 0x252   : > { %1374 = vst.msk [vmem:[#allocation2 + $0x1e] sm:$0x1] %vm854_vm11, %v1359_v18 }
 0x253   : > { %1150 = vrot.lane.b32.xlu0 %v967_v20, %s2697_s24  ;;  %1461 = vst.msk [vmem:[#allocation2 + $0x1f] sm:$0x1] %vm854_vm11, %v1446_v21 }
 0x254   : > { %859 = vst.msk [vmem:[#allocation2 + $0x20] sm:$0x1] %vm854_vm11, %v843_v22 }
 0x255   : > { %934 = vst.msk [vmem:[#allocation2 + $0x21] sm:$0x1] %vm854_vm11, %v919_v26 }
 0x256   : > { %1030 = vst.msk [vmem:[#allocation2 + $0x22] sm:$0x1] %vm854_vm11, %v1015_v28  ;;  %v1318_v28 = vperm.slane %v1239_v58, 0 }
 0x257   : > { %1117 = vst.msk [vmem:[#allocation2 + $0x23] sm:$0x1] %vm854_vm11, %v1102_v54 }
 0x258   : > { %1466 = vrot.lane.b32.xlu2 %v2986_v57, %s2697_s24  ;;  %1379 = vrot.lane.b32.xlu1 %v2986_v57, %s2698_s21  ;;  %1204 = vst.msk [vmem:[#allocation2 + $0x24] sm:$0x1] %vm854_vm11, %v1189_v30  ;;  %v920_v57 = vrot.slane %v3023_v23, 5  ;;  %v972_v23 = vperm.slane %v893_v52, 0 }
 0x259   : > { %1279 = vst.msk [vmem:[#allocation2 + $0x25] sm:$0x1] %vm854_vm11, %v1264_v32 }
 0x25a   : > { %1375 = vst.msk [vmem:[#allocation2 + $0x26] sm:$0x1] %vm854_vm11, %v1360_v34 }
 0x25b   : > { %1152 = vrot.lane.b32.xlu0 %v968_v35, %s2697_s24  ;;  %1462 = vst.msk [vmem:[#allocation2 + $0x27] sm:$0x1] %vm854_vm11, %v1447_v36 }
 0x25c   : > { %860 = vst.msk [vmem:[#allocation2 + $0x28] sm:$0x1] %vm854_vm11, %v844_v37 }
 0x25d   : > { %935 = vst.msk [vmem:[#allocation2 + $0x29] sm:$0x1] %vm854_vm11, %v920_v57 }
 0x25e   : > { %1031 = vst.msk [vmem:[#allocation2 + $0x2a] sm:$0x1] %vm854_vm11, %v1016_v38 }
 0x25f   : > { %1118 = vst.msk [vmem:[#allocation2 + $0x2b] sm:$0x1] %vm854_vm11, %v1103_v39 }
 0x260   : > { %1148 = vrot.lane.b32.xlu2 %v966_v9, %s2697_s24  ;;  %974 = vrot.lane.b32.xlu1 %v966_v9, %s2696_s16  ;;  %1205 = vst.msk [vmem:[#allocation2 + $0x2c] sm:$0x1] %vm854_vm11, %v1190_v41 }
 0x261   : > { %1280 = vst.msk [vmem:[#allocation2 + $0x2d] sm:$0x1] %vm854_vm11, %v1265_v44 }
 0x262   : > { %1376 = vst.msk [vmem:[#allocation2 + $0x2e] sm:$0x1] %vm854_vm11, %v1361_v49 }
 0x263   : > { %1154 = vrot.lane.b32.xlu0 %v969_v56, %s2697_s24  ;;  %1463 = vst.msk [vmem:[#allocation2 + $0x2f] sm:$0x1] %vm854_vm11, %v1448_v59 }
 0x264   : > { %861 = vst.msk [vmem:[#allocation2 + $0x30] sm:$0x1] %vm854_vm11, %v845_v43 }
 0x265   : > { %936 = vst.msk [vmem:[#allocation2 + $0x31] sm:$0x1] %vm854_vm11, %v921_v60 }
 0x266   : > { %1032 = vst.msk [vmem:[#allocation2 + $0x32] sm:$0x1] %vm854_vm11, %v1017_v61 }
 0x267   : > { %1119 = vst.msk [vmem:[#allocation2 + $0x33] sm:$0x1] %vm854_vm11, %v1104_v50 }
 0x268   : > { %1063 = vrot.lane.b32.xlu2 %v967_v20, %s2698_s21  ;;  %976 = vrot.lane.b32.xlu1 %v967_v20, %s2696_s16  ;;  %1206 = vst.msk [vmem:[#allocation2 + $0x34] sm:$0x1] %vm854_vm11, %v1191_v62 }
 0x269   : > { %1281 = vst.msk [vmem:[#allocation2 + $0x35] sm:$0x1] %vm854_vm11, %v1266_v63 }
 0x26a   : > { %v1122_v2 = vpop.permute.xlu2 %1121  ;;  %1377 = vst.msk [vmem:[#allocation2 + $0x36] sm:$0x1] %vm854_vm11, %v1362_v0 }
 0x26b   : > { %1156 = vrot.lane.b32.xlu0 %v970_v1, %s2697_s24  ;;  %v1124_v4 = vmul.f32 %v1122_v2, %v2979_v55  ;;  %1464 = vst.msk [vmem:[#allocation2 + $0x37] sm:$0x1] %vm854_vm11, %v1449_v3 }
 0x26c   : > { %862 = vst.msk [vmem:[#allocation2 + $0x38] sm:$0x1] %vm854_vm11, %v846_v13 }
 0x26d   : > { %v1126_v5 = vrot.slane %v1124_v4, 1  ;;  %1140 = vst.msk [vmem:[#allocation3 + $0x3] sm:$0x1] %vm854_vm11, %v1124_v4  ;;  %v1127_v48 = vrot.slane %v1124_v4, 2  ;;  %v1128_v40 = vrot.slane %v1124_v4, 3  ;;  %v1129_v6 = vrot.slane %v1124_v4, 4 }
 0x26e   : > { %v1130_v7 = vrot.slane %v1124_v4, 5  ;;  %v1131_v8 = vrot.slane %v1124_v4, 6  ;;  %v1132_v9 = vrot.slane %v1124_v4, 7  ;;  %937 = vst.msk [vmem:[#allocation2 + $0x39] sm:$0x1] %vm854_vm11, %v922_v14 }
 0x26f   : > { %1141 = vst.msk [vmem:[#allocation3 + $0xb] sm:$0x1] %vm854_vm11, %v1126_v5 }
 0x270   : > { %1142 = vst.msk [vmem:[#allocation3 + $0x13] sm:$0x1] %vm854_vm11, %v1127_v48  ;;  %1065 = vrot.lane.b32.xlu2 %v968_v35, %s2698_s21  ;;  %978 = vrot.lane.b32.xlu1 %v968_v35, %s2696_s16 }
 0x271   : > { %1143 = vst.msk [vmem:[#allocation3 + $0x1b] sm:$0x1] %vm854_vm11, %v1128_v40 }
 0x272   : > { %1144 = vst.msk [vmem:[#allocation3 + $0x23] sm:$0x1] %vm854_vm11, %v1129_v6  ;;  %v1494_v12 = vpop.permute.xlu2 %1493 }
 0x273   : > { %1145 = vst.msk [vmem:[#allocation3 + $0x2b] sm:$0x1] %vm854_vm11, %v1130_v7  ;;  %1158 = vrot.lane.b32.xlu0 %v971_v10, %s2697_s24 }
 0x274   : > { %1146 = vst.msk [vmem:[#allocation3 + $0x33] sm:$0x1] %vm854_vm11, %v1131_v8 }
 0x275   : > { %1147 = vst.msk [vmem:[#allocation3 + $0x3b] sm:$0x1] %vm854_vm11, %v1132_v9 }
 0x276   : > { %1517 = vst.msk [vmem:[#allocation4 + $0x7] sm:$0x1] %vm854_vm11, %v1494_v12 }
 0x277   : > { %1033 = vst.msk [vmem:[#allocation2 + $0x3a] sm:$0x1] %vm854_vm11, %v1018_v15 }
 0x278   : > { %980 = vrot.lane.b32.xlu2 %v969_v56, %s2696_s16  ;;  %1067 = vrot.lane.b32.xlu1 %v969_v56, %s2698_s21  ;;  %1120 = vst.msk [vmem:[#allocation2 + $0x3b] sm:$0x1] %vm854_vm11, %v1105_v51 }
 0x279   : > { %1207 = vst.msk [vmem:[#allocation2 + $0x3c] sm:$0x1] %vm854_vm11, %v1192_v19 }
 0x27a   : > { %v1409_v16 = vpop.permute.xlu2 %1408  ;;  %1282 = vst.msk [vmem:[#allocation2 + $0x3d] sm:$0x1] %vm854_vm11, %v1267_v25 }
 0x27b   : > { %1160 = vrot.lane.b32.xlu0 %v972_v23, %s2697_s24  ;;  %1431 = vst.msk [vmem:[#allocation4 + $0xe] sm:$0x1] %vm854_vm11, %v1409_v16 }
 0x27c   : > { %1378 = vst.msk [vmem:[#allocation2 + $0x3e] sm:$0x1] %vm854_vm11, %v1363_v27 }
 0x27d   : > { %1465 = vst.msk [vmem:[#allocation2 + $0x3f] sm:$0x1] %vm854_vm11, %v1450_v17 }
 0x280   : > { %1069 = vrot.lane.b32.xlu2 %v970_v1, %s2698_s21  ;;  %982 = vrot.lane.b32.xlu1 %v970_v1, %s2696_s16 }
 0x282   : > { %v1411_v42 = vpop.permute.xlu2 %1410  ;;  %v940_v46 = vpop.permute.xlu1 %939 }
 0x283   : > { %1162 = vrot.lane.b32.xlu0 %v973_v29, %s2697_s24  ;;  %1432 = vst.msk [vmem:[#allocation4 + $0x16] sm:$0x1] %vm854_vm11, %v1411_v42  ;;  %v942_v47 = vmul.f32 %v940_v46, %v2979_v55 }
 0x285   : > { %v944_v52 = vrot.slane %v942_v47, 1  ;;  %v945_v18 = vrot.slane %v942_v47, 2  ;;  %v946_v20 = vrot.slane %v942_v47, 3  ;;  %958 = vst.msk [vmem:[#allocation3 + $0x1] sm:$0x1] %vm854_vm11, %v942_v47  ;;  %v1407_v21 = vpop.permute.xlu0 %1406  ;;  %v947_v22 = vrot.slane %v942_v47, 4 }
 0x286   : > { %1430 = vst.msk [vmem:[#allocation4 + $0x6] sm:$0x1] %vm854_vm11, %v1407_v21  ;;  %v948_v26 = vrot.slane %v942_v47, 5  ;;  %v949_v45 = vrot.slane %v942_v47, 6  ;;  %v950_v53 = vrot.slane %v942_v47, 7 }
 0x287   : > { %959 = vst.msk [vmem:[#allocation3 + $0x9] sm:$0x1] %vm854_vm11, %v944_v52 }
 0x288   : > { %960 = vst.msk [vmem:[#allocation3 + $0x11] sm:$0x1] %vm854_vm11, %v945_v18  ;;  %1071 = vrot.lane.b32.xlu2 %v971_v10, %s2698_s21  ;;  %984 = vrot.lane.b32.xlu1 %v971_v10, %s2696_s16 }
 0x289   : > { %961 = vst.msk [vmem:[#allocation3 + $0x19] sm:$0x1] %vm854_vm11, %v946_v20 }
 0x28a   : > { %962 = vst.msk [vmem:[#allocation3 + $0x21] sm:$0x1] %vm854_vm11, %v947_v22  ;;  %v1326_v54 = vpop.permute.xlu2 %1325  ;;  %v1035_v30 = vpop.permute.xlu1 %1034 }
 0x28b   : > { %963 = vst.msk [vmem:[#allocation3 + $0x29] sm:$0x1] %vm854_vm11, %v948_v26  ;;  %1507 = vrot.lane.b32.xlu0 %v1318_v28, %s2697_s24  ;;  %v1037_v32 = vmul.f32 %v1035_v30, %v2979_v55  ;;  %s2011_s24 = scalar_lea.hbm %s3563_s14, %s2191_s2 }
 0x28c   : > { %964 = vst.msk [vmem:[#allocation3 + $0x31] sm:$0x1] %vm854_vm11, %v949_v45  ;;  %s2015_s29 = sshll.u32 %s2011_s24, 4  ;;  %s2016_s29 = int_to_ptr.hbm [resolvable:$true] %s2015_s29 }
 0x28d   : > { %965 = vst.msk [vmem:[#allocation3 + $0x39] sm:$0x1] %vm854_vm11, %v950_v53  ;;  %v1039_v34 = vrot.slane %v1037_v32, 1  ;;  %v1040_v35 = vrot.slane %v1037_v32, 2  ;;  %v1496_v36 = vpop.permute.xlu0 %1495  ;;  %v1041_v33 = vrot.slane %v1037_v32, 3  ;;  %v1042_v58 = vrot.slane %v1037_v32, 4 }
 0x28e   : > { %1346 = vst.msk [vmem:[#allocation4 + $0x1d] sm:$0x1] %vm854_vm11, %v1326_v54  ;;  %v1043_v37 = vrot.slane %v1037_v32, 5  ;;  %v1044_v57 = vrot.slane %v1037_v32, 6  ;;  %v1045_v38 = vrot.slane %v1037_v32, 7  ;;  %v1525_v54 = vld [vmem:[#allocation2] sm:$0xff] }
 0x28f   : > { %1053 = vst.msk [vmem:[#allocation3 + $0x2] sm:$0x1] %vm854_vm11, %v1037_v32  ;;  %s2613_s17 = sshra.s32 %s2016_s29, 4  ;;  %s2614_s17 = int_to_ptr.hbm [resolvable:$true] %s2613_s17 }
 0x290   : > { %1054 = vst.msk [vmem:[#allocation3 + $0xa] sm:$0x1] %vm854_vm11, %v1039_v34  ;;  %1073 = vrot.lane.b32.xlu2 %v972_v23, %s2698_s21  ;;  %986 = vrot.lane.b32.xlu1 %v972_v23, %s2696_s16  ;;  %v1526_v34 = vmul.f32 0.0, %v1525_v54  ;;  %v1583_v54 = vld [vmem:[#allocation2 + $0x30] sm:$0xff]  ;;  %s2615_s5 = scalar_lea.hbm %s2614_s17, 8  ;;  %p2620_p3 = scmp.lt.s32.totalorder %s2614_s17, %s3563_s14 }
 0x291   : > { %1055 = vst.msk [vmem:[#allocation3 + $0x12] sm:$0x1] %vm854_vm11, %v1040_v35  ;;  %p2616_p0 = scmp.ne.s32.totalorder %s2614_s17, %s2615_s5  ;;  %p2621_p4 = scmp.lt.s32.totalorder %s2619_s28, %s2615_s5 }
 0x292   : > { %1056 = vst.msk [vmem:[#allocation3 + $0x1a] sm:$0x1] %vm854_vm11, %v1041_v33  ;;  %v1415_v39 = vpop.permute.xlu2 %1414  ;;  %v1320_v41 = vpop.permute.xlu1 %1319 }
 0x293   : > { %1057 = vst.msk [vmem:[#allocation3 + $0x22] sm:$0x1] %vm854_vm11, %v1042_v58  ;;  %v1533_v58 = vld [vmem:[#allocation2 + $0x8] sm:$0xff]  ;;  %p2617_p1 = pnand %p2616_p0, %p2812_p5  ;;  %p2622_p7 = por %p2621_p4, %p2620_p3 }
 0x294   : > { %1058 = vst.msk [vmem:[#allocation3 + $0x2a] sm:$0x1] %vm854_vm11, %v1043_v37 }
 0x295   : > { %1059 = vst.msk [vmem:[#allocation3 + $0x32] sm:$0x1] %vm854_vm11, %v1044_v57  ;;  %v1498_v44 = vpop.permute.xlu0 %1497  ;;  %p2618_p2 = pneg %p2617_p1 }
 0x296   : > { %1060 = vst.msk [vmem:[#allocation3 + $0x3a] sm:$0x1] %vm854_vm11, %v1045_v38 }
 0x297   : > { %1518 = vst.msk [vmem:[#allocation4 + $0xf] sm:$0x1] %vm854_vm11, %v1496_v36  ;;  %p2623_p8 = pnand %p2622_p7, %p2618_p2 }
 0x298   : > { %1434 = vst.msk [vmem:[#allocation4 + $0x26] sm:$0x1] %vm854_vm11, %v1415_v39  ;;  %1075 = vrot.lane.b32.xlu2 %v973_v29, %s2698_s21  ;;  %988 = vrot.lane.b32.xlu1 %v973_v29, %s2696_s16 }
 0x299   : > { %1343 = vst.msk [vmem:[#allocation4 + $0x5] sm:$0x1] %vm854_vm11, %v1320_v41 }
 0x29a   : > { %1519 = vst.msk [vmem:[#allocation4 + $0x17] sm:$0x1] %vm854_vm11, %v1498_v44  ;;  %v1417_v49 = vpop.permute.xlu2 %1416  ;;  %v1322_v56 = vpop.permute.xlu1 %1321 }
 0x29b   : > { %1435 = vst.msk [vmem:[#allocation4 + $0x2e] sm:$0x1] %vm854_vm11, %v1417_v49 }
 0x29c   : > { %1344 = vst.msk [vmem:[#allocation4 + $0xd] sm:$0x1] %vm854_vm11, %v1322_v56 }
 0x29d   : > { %v1500_v59 = vpop.permute.xlu0 %1499 }
 0x29e   : > { %1520 = vst.msk [vmem:[#allocation4 + $0x1f] sm:$0x1] %vm854_vm11, %v1500_v59 }
 0x2a0   : > { %1420 = vrot.lane.b32.xlu2 %v1318_v28, %s2698_s21  ;;  %1333 = vrot.lane.b32.xlu1 %v1318_v28, %s2696_s16  ;;  %s578_s21 = scalar_lea.vmem [#allocation19], %s2176_s20 }
 0x2a1   : > { %s2013_s25 = sshll.u32 %s578_s21, 4  ;;  %s2014_s25 = int_to_ptr.vmem [resolvable:$true] %s2013_s25 }
 0x2a2   : > { %v1419_v43 = vpop.permute.xlu2 %1418  ;;  %v1324_v60 = vpop.permute.xlu1 %1323 }
 0x2a3   : > { %1436 = vst.msk [vmem:[#allocation4 + $0x36] sm:$0x1] %vm854_vm11, %v1419_v43 }
 0x2a4   : > { %1345 = vst.msk [vmem:[#allocation4 + $0x15] sm:$0x1] %vm854_vm11, %v1324_v60  ;;  %v1543_v60 = vld [vmem:[#allocation2 + $0x10] sm:$0xff] }
 0x2a5   : > { %v1502_v61 = vpop.permute.xlu0 %1501 }
 0x2a6   : > { %1521 = vst.msk [vmem:[#allocation4 + $0x27] sm:$0x1] %vm854_vm11, %v1502_v61 }
 0x2aa   : > { %v1285_v50 = vpop.permute.xlu2 %1284  ;;  %v1413_v62 = vpop.permute.xlu1 %1412 }
 0x2ab   : > { %v1287_v63 = vmul.f32 %v1285_v50, %v2979_v55  ;;  %1433 = vst.msk [vmem:[#allocation4 + $0x1e] sm:$0x1] %vm854_vm11, %v1413_v62 }
 0x2ad   : > { %v1289_v0 = vrot.slane %v1287_v63, 1  ;;  %v1290_v1 = vrot.slane %v1287_v63, 2  ;;  %v1291_v2 = vrot.slane %v1287_v63, 3  ;;  %1303 = vst.msk [vmem:[#allocation3 + $0x5] sm:$0x1] %vm854_vm11, %v1287_v63  ;;  %v1504_v3 = vpop.permute.xlu0 %1503  ;;  %v1292_v4 = vrot.slane %v1287_v63, 4 }
 0x2ae   : > { %1522 = vst.msk [vmem:[#allocation4 + $0x2f] sm:$0x1] %vm854_vm11, %v1504_v3  ;;  %v1293_v5 = vrot.slane %v1287_v63, 5  ;;  %v1294_v48 = vrot.slane %v1287_v63, 6  ;;  %v1295_v40 = vrot.slane %v1287_v63, 7 }
 0x2af   : > { %1304 = vst.msk [vmem:[#allocation3 + $0xd] sm:$0x1] %vm854_vm11, %v1289_v0 }
 0x2b0   : > { %1305 = vst.msk [vmem:[#allocation3 + $0x15] sm:$0x1] %vm854_vm11, %v1290_v1 }
 0x2b1   : > { %1306 = vst.msk [vmem:[#allocation3 + $0x1d] sm:$0x1] %vm854_vm11, %v1291_v2 }
 0x2b2   : > { %1307 = vst.msk [vmem:[#allocation3 + $0x25] sm:$0x1] %vm854_vm11, %v1292_v4  ;;  %v1467_v6 = vpop.permute.xlu2 %1466  ;;  %v1328_v7 = vpop.permute.xlu1 %1327  ;;  %v1553_v4 = vld [vmem:[#allocation2 + $0x18] sm:$0xff] }
 0x2b3   : > { %1308 = vst.msk [vmem:[#allocation3 + $0x2d] sm:$0x1] %vm854_vm11, %v1293_v5  ;;  %v1469_v8 = vmul.f32 %v1467_v6, %v2979_v55 }
 0x2b4   : > { %1309 = vst.msk [vmem:[#allocation3 + $0x35] sm:$0x1] %vm854_vm11, %v1294_v48 }
 0x2b5   : > { %1310 = vst.msk [vmem:[#allocation3 + $0x3d] sm:$0x1] %vm854_vm11, %v1295_v40  ;;  %v1471_v9 = vrot.slane %v1469_v8, 1  ;;  %v1472_v10 = vrot.slane %v1469_v8, 2  ;;  %v1473_v12 = vrot.slane %v1469_v8, 3  ;;  %v1506_v13 = vpop.permute.xlu0 %1505  ;;  %v1474_v14 = vrot.slane %v1469_v8, 4 }
 0x2b6   : > { %1485 = vst.msk [vmem:[#allocation3 + $0x7] sm:$0x1] %vm854_vm11, %v1469_v8  ;;  %v1475_v15 = vrot.slane %v1469_v8, 5  ;;  %v1476_v51 = vrot.slane %v1469_v8, 6  ;;  %v1477_v19 = vrot.slane %v1469_v8, 7 }
 0x2b7   : > { %1486 = vst.msk [vmem:[#allocation3 + $0xf] sm:$0x1] %vm854_vm11, %v1471_v9 }
 0x2b8   : > { %1487 = vst.msk [vmem:[#allocation3 + $0x17] sm:$0x1] %vm854_vm11, %v1472_v10 }
 0x2b9   : > { %1488 = vst.msk [vmem:[#allocation3 + $0x1f] sm:$0x1] %vm854_vm11, %v1473_v12  ;;  %v1563_v12 = vld [vmem:[#allocation2 + $0x20] sm:$0xff] }
 0x2ba   : > { %1489 = vst.msk [vmem:[#allocation3 + $0x27] sm:$0x1] %vm854_vm11, %v1474_v14  ;;  %v1149_v23 = vpop.permute.xlu2 %1148  ;;  %v1330_v25 = vpop.permute.xlu1 %1329 }
 0x2bb   : > { %1490 = vst.msk [vmem:[#allocation3 + $0x2f] sm:$0x1] %vm854_vm11, %v1475_v15 }
 0x2bc   : > { %1491 = vst.msk [vmem:[#allocation3 + $0x37] sm:$0x1] %vm854_vm11, %v1476_v51 }
 0x2bd   : > { %1492 = vst.msk [vmem:[#allocation3 + $0x3f] sm:$0x1] %vm854_vm11, %v1477_v19  ;;  %v1062_v16 = vpop.permute.xlu0 %1061 }
 0x2be   : > { %1347 = vst.msk [vmem:[#allocation4 + $0x25] sm:$0x1] %vm854_vm11, %v1328_v7 }
 0x2bf   : > { %1523 = vst.msk [vmem:[#allocation4 + $0x37] sm:$0x1] %vm854_vm11, %v1506_v13 }
 0x2c0   : > { %1172 = vst.msk [vmem:[#allocation4 + $0x3] sm:$0x1] %vm854_vm11, %v1149_v23 }
 0x2c1   : > { %1348 = vst.msk [vmem:[#allocation4 + $0x2d] sm:$0x1] %vm854_vm11, %v1330_v25 }
 0x2c2   : > { %1085 = vst.msk [vmem:[#allocation4 + $0x2] sm:$0x1] %vm854_vm11, %v1062_v16  ;;  %v1064_v27 = vpop.permute.xlu2 %1063  ;;  %v1332_v17 = vpop.permute.xlu1 %1331  ;;  %v2336_v16 = vld [vmem:[#allocation18] ss:$0 sm:$0xff] }
 0x2c3   : > { %1086 = vst.msk [vmem:[#allocation4 + $0xa] sm:$0x1] %vm854_vm11, %v1064_v27 }
 0x2c4   : > { %1349 = vst.msk [vmem:[#allocation4 + $0x35] sm:$0x1] %vm854_vm11, %v1332_v17  ;;  %v1573_v17 = vld [vmem:[#allocation2 + $0x28] sm:$0xff] }
 0x2c5   : > { %v1151_v29 = vpop.permute.xlu0 %1150 }
 0x2c6   : > { %1173 = vst.msk [vmem:[#allocation4 + $0xb] sm:$0x1] %vm854_vm11, %v1151_v29  ;;  %v1845_v29 = vpop.f32.mrf.mxu2 }
 0x2ca   : > { %v1066_v42 = vpop.permute.xlu2 %1065  ;;  %v1380_v46 = vpop.permute.xlu1 %1379 }
 0x2cb   : > { %1087 = vst.msk [vmem:[#allocation4 + $0x12] sm:$0x1] %vm854_vm11, %v1066_v42  ;;  %v1382_v47 = vmul.f32 %v1380_v46, %v2979_v55 }
 0x2cd   : > { %v1384_v52 = vrot.slane %v1382_v47, 1  ;;  %v1385_v18 = vrot.slane %v1382_v47, 2  ;;  %v1386_v20 = vrot.slane %v1382_v47, 3  ;;  %1398 = vst.msk [vmem:[#allocation3 + $0x6] sm:$0x1] %vm854_vm11, %v1382_v47  ;;  %v1153_v21 = vpop.permute.xlu0 %1152  ;;  %v1387_v22 = vrot.slane %v1382_v47, 4 }
 0x2ce   : > { %1174 = vst.msk [vmem:[#allocation4 + $0x13] sm:$0x1] %vm854_vm11, %v1153_v21  ;;  %v1388_v26 = vrot.slane %v1382_v47, 5  ;;  %v1389_v45 = vrot.slane %v1382_v47, 6  ;;  %v1390_v53 = vrot.slane %v1382_v47, 7  ;;  %v1945_v47 = vld [vmem:[%s3559_s10 + $0x18] sm:$0xff] }
 0x2cf   : > { %1399 = vst.msk [vmem:[#allocation3 + $0xe] sm:$0x1] %vm854_vm11, %v1384_v52  ;;  %v1944_v52 = vld [vmem:[%s3559_s10 + $0x10] sm:$0xff]  ;;  %1965 = vmatpush.msrb.mxu3 %v1945_v47 }
 0x2d0   : > { %1400 = vst.msk [vmem:[#allocation3 + $0x16] sm:$0x1] %vm854_vm11, %v1385_v18  ;;  %v1943_v18 = vld [vmem:[%s3559_s10 + $0x8] sm:$0xff] }
 0x2d1   : > { %1401 = vst.msk [vmem:[#allocation3 + $0x1e] sm:$0x1] %vm854_vm11, %v1386_v20  ;;  %v1846_v20 = vadd.f32 %v2336_v16, %v1845_v29  ;;  %1966 = vmatpush.msrb.mxu3 %v1944_v52 }
 0x2d2   : > { %1402 = vst.msk [vmem:[#allocation3 + $0x26] sm:$0x1] %vm854_vm11, %v1387_v22  ;;  %v981_v55 = vpop.permute.xlu2 %980  ;;  %v975_v28 = vpop.permute.xlu1 %974 }
 0x2d3   : > { %1403 = vst.msk [vmem:[#allocation3 + $0x2e] sm:$0x1] %vm854_vm11, %v1388_v26  ;;  %v1942_v26 = vld [vmem:[%s3559_s10] sm:$0xff]  ;;  %1967 = vmatpush.msrb.mxu3 %v1943_v18 }
 0x2d4   : > { %1404 = vst.msk [vmem:[#allocation3 + $0x36] sm:$0x1] %vm854_vm11, %v1389_v45  ;;  %v1527_v32 = vld [vmem:[#allocation3] sm:$0xff] }
 0x2d5   : > { %1405 = vst.msk [vmem:[#allocation3 + $0x3e] sm:$0x1] %vm854_vm11, %v1390_v53  ;;  %v1155_v30 = vpop.permute.xlu0 %1154  ;;  %v1528_v35 = vadd.f32 %v1527_v32, %v1526_v34  ;;  %1968 = vmatpush.msrb.mxu3 %v1942_v26 }
 0x2d6   : > { %1001 = vst.msk [vmem:[#allocation4 + $0x19] sm:$0x1] %vm854_vm11, %v981_v55  ;;  %v1536_v41 = vld [vmem:[#allocation3 + $0x8] sm:$0xff]  ;;  %v2187_v55 = vmul.f32 -1.442695, %v1846_v20 }
 0x2d7   : > { %998 = vst.msk [vmem:[#allocation4 + $0x1] sm:$0x1] %vm854_vm11, %v975_v28  ;;  %v1534_v37 = vmul.f32 %v1533_v58, %v1528_v35  ;;  %v1546_v62 = vld [vmem:[#allocation3 + $0x10] sm:$0xff] }
 0x2d8   : > { %1175 = vst.msk [vmem:[#allocation4 + $0x1b] sm:$0x1] %vm854_vm11, %v1155_v30  ;;  %v1556_v40 = vld [vmem:[#allocation3 + $0x18] sm:$0xff]  ;;  %2364 = vpow2.f32 %v2187_v55 }
 0x2d9   : > { %v1537_v44 = vadd.f32 %v1536_v41, %v1534_v37  ;;  %v1566_v15 = vld [vmem:[#allocation3 + $0x20] sm:$0xff] }
 0x2da   : > { %v1070_v36 = vpop.permute.xlu2 %1069  ;;  %v977_v33 = vpop.permute.xlu1 %976  ;;  %v1576_v21 = vld [vmem:[#allocation3 + $0x28] sm:$0xff] }
 0x2db   : > { %1089 = vst.msk [vmem:[#allocation4 + $0x22] sm:$0x1] %vm854_vm11, %v1070_v36  ;;  %v1544_v61 = vmul.f32 %v1543_v60, %v1537_v44  ;;  %v1586_v32 = vld [vmem:[#allocation3 + $0x30] sm:$0xff] }
 0x2dc   : > { %999 = vst.msk [vmem:[#allocation4 + $0x9] sm:$0x1] %vm854_vm11, %v977_v33 }
 0x2dd   : > { %v1157_v57 = vpop.permute.xlu0 %1156  ;;  %v1547_v63 = vadd.f32 %v1546_v62, %v1544_v61 }
 0x2de   : > { %v1529_v38 = vld [vmem:[#allocation4] sm:$0xff]  ;;  %1176 = vst.msk [vmem:[#allocation4 + $0x23] sm:$0x1] %vm854_vm11, %v1157_v57  ;;  %v2365_v60 = vpop.eup %2364 }
 0x2df   : > { %v1530_v39 = vmul.f32 %v1529_v38, %v1528_v35  ;;  %v1554_v5 = vmul.f32 %v1553_v4, %v1547_v63  ;;  %v2327_v35 = vld [vmem:[%s3562_s13] ss:$0 sm:$0xff]  ;;  %v1593_v4 = vld [vmem:[#allocation2 + $0x38] sm:$0xff] }
 0x2e1   : > { %1531 = vst.msk [vmem:[#allocation4] sm:$0xff] %vm728_vm9, %v1530_v39  ;;  %v1557_v6 = vadd.f32 %v1556_v40, %v1554_v5 }
 0x2e2   : > { %v1072_v49 = vpop.permute.xlu2 %1071  ;;  %v979_v56 = vpop.permute.xlu1 %978 }
 0x2e3   : > { %v1539_v59 = vld [vmem:[#allocation4 + $0x8] sm:$0xff]  ;;  %1090 = vst.msk [vmem:[#allocation4 + $0x2a] sm:$0x1] %vm854_vm11, %v1072_v49  ;;  %v1564_v13 = vmul.f32 %v1563_v12, %v1557_v6 }
 0x2e4   : > { %v1540_v43 = vmul.f32 %v1539_v59, %v1537_v44  ;;  %1000 = vst.msk [vmem:[#allocation4 + $0x11] sm:$0x1] %vm854_vm11, %v979_v56  ;;  %v3416_v56 = vmul.f32 %v2327_v35, %v2923_v24 }
 0x2e5   : > { %v1159_v50 = vpop.permute.xlu0 %1158  ;;  %v1567_v51 = vadd.f32 %v1566_v15, %v1564_v13 }
 0x2e6   : > { %1541 = vst.msk [vmem:[#allocation4 + $0x8] sm:$0xff] %vm728_vm9, %v1540_v43  ;;  %v1793_v12 = vrot.slane %v3416_v56, 2 }
 0x2e7   : > { %1177 = vst.msk [vmem:[#allocation4 + $0x2b] sm:$0x1] %vm854_vm11, %v1159_v50  ;;  %v1574_v42 = vmul.f32 %v1573_v17, %v1567_v51 }
 0x2e8   : > { %v3409_v39 = vld [vmem:[#allocation4] sm:$0xff] }
 0x2e9   : > { %v1577_v22 = vadd.f32 %v1576_v21, %v1574_v42  ;;  %v1618_v61 = vrot.slane %v3409_v39, 1  ;;  %v1666_v55 = vrot.slane %v3409_v39, 3 }
 0x2ea   : > { %v1074_v0 = vpop.permute.xlu2 %1073  ;;  %v1068_v1 = vpop.permute.xlu1 %1067 }
 0x2eb   : > { %v1549_v2 = vld [vmem:[#allocation4 + $0x10] sm:$0xff]  ;;  %1091 = vst.msk [vmem:[#allocation4 + $0x32] sm:$0x1] %vm854_vm11, %v1074_v0  ;;  %v1584_v30 = vmul.f32 %v1583_v54, %v1577_v22 }
 0x2ec   : > { %v1550_v3 = vmul.f32 %v1549_v2, %v1547_v63  ;;  %1088 = vst.msk [vmem:[#allocation4 + $0x1a] sm:$0x1] %vm854_vm11, %v1068_v1  ;;  %v3427_v1 = vadd.f32 1.0, %v2365_v60 }
 0x2ed   : > { %v1161_v48 = vpop.permute.xlu0 %1160  ;;  %v3399_v34 = vld [vmem:[#allocation4 + $0x8] sm:$0xff]  ;;  %v1587_v36 = vadd.f32 %v1586_v32, %v1584_v30 }
 0x2ee   : > { %1551 = vst.msk [vmem:[#allocation4 + $0x10] sm:$0xff] %vm728_vm9, %v1550_v3  ;;  %v1619_v44 = vrot.slane %v3399_v34, 1  ;;  %v1643_v2 = vrot.slane %v3399_v34, 2  ;;  %v1792_v3 = vrot.slane %v3416_v56, 1  ;;  %2366 = vrcp.f32 %v3427_v1 }
 0x2ef   : > { %1178 = vst.msk [vmem:[#allocation4 + $0x33] sm:$0x1] %vm854_vm11, %v1161_v48  ;;  %v1634_v48 = vadd.f32 %v1618_v61, %v3409_v39  ;;  %v1667_v16 = vrot.slane %v3399_v34, 3  ;;  %v1691_v54 = vrot.slane %v3399_v34, 4  ;;  %vm1857_vm12 = vweird.f32 %v3427_v1 }
 0x2f0   : > { %v1635_v63 = vadd.f32 %v1619_v44, %v3399_v34 }
 0x2f2   : > { %v1076_v7 = vpop.permute.xlu2 %1075  ;;  %v983_v8 = vpop.permute.xlu1 %982 }
 0x2f3   : > { %v1559_v9 = vld [vmem:[#allocation4 + $0x18] sm:$0xff]  ;;  %1092 = vst.msk [vmem:[#allocation4 + $0x3a] sm:$0x1] %vm854_vm11, %v1076_v7 }
 0x2f4   : > { %v1560_v10 = vmul.f32 %v1559_v9, %v1557_v6  ;;  %1002 = vst.msk [vmem:[#allocation4 + $0x21] sm:$0x1] %vm854_vm11, %v983_v8  ;;  %v1594_v8 = vmul.f32 %v1593_v4, %v1587_v36 }
 0x2f5   : > { %v1163_v14 = vpop.permute.xlu0 %1162  ;;  %v3404_v33 = vld [vmem:[#allocation4 + $0x10] sm:$0xff] }
 0x2f6   : > { %1561 = vst.msk [vmem:[#allocation4 + $0x18] sm:$0xff] %vm728_vm9, %v1560_v10  ;;  %v1620_v49 = vrot.slane %v3404_v33, 1  ;;  %v1644_v7 = vrot.slane %v3404_v33, 2  ;;  %v1659_v10 = vadd.f32 %v1643_v2, %v1635_v63  ;;  %v1668_v42 = vrot.slane %v3404_v33, 3 }
 0x2f7   : > { %1179 = vst.msk [vmem:[#allocation4 + $0x3b] sm:$0x1] %vm854_vm11, %v1163_v14  ;;  %v1642_v14 = vrot.slane %v3409_v39, 2  ;;  %v1690_v63 = vrot.slane %v3409_v39, 4  ;;  %v1794_v2 = vrot.slane %v3416_v56, 3 }
 0x2f8   : > { %v1636_v0 = vadd.f32 %v1620_v49, %v3404_v33  ;;  %v1683_v20 = vadd.f32 %v1667_v16, %v1659_v10  ;;  %v1796_v16 = vrot.slane %v3416_v56, 5 }
 0x2fa   : > { %v1421_v19 = vpop.permute.xlu2 %1420  ;;  %v985_v23 = vpop.permute.xlu1 %984 }
 0x2fb   : > { %v1569_v25 = vld [vmem:[#allocation4 + $0x20] sm:$0xff]  ;;  %1437 = vst.msk [vmem:[#allocation4 + $0x3e] sm:$0x1] %vm854_vm11, %v1421_v19  ;;  %v1660_v19 = vadd.f32 %v1644_v7, %v1636_v0 }
 0x2fc   : > { %v1570_v27 = vmul.f32 %v1569_v25, %v1567_v51  ;;  %1003 = vst.msk [vmem:[#allocation4 + $0x29] sm:$0x1] %vm854_vm11, %v985_v23 }
 0x2fd   : > { %v1508_v46 = vpop.permute.xlu0 %1507  ;;  %v3406_v57 = vld [vmem:[#allocation4 + $0x18] sm:$0xff] }
 0x2fe   : > { %1571 = vst.msk [vmem:[#allocation4 + $0x20] sm:$0xff] %vm728_vm9, %v1570_v27  ;;  %v1621_v43 = vrot.slane %v3406_v57, 1  ;;  %v1645_v9 = vrot.slane %v3406_v57, 2  ;;  %v1658_v27 = vadd.f32 %v1642_v14, %v1634_v48  ;;  %v1669_v18 = vrot.slane %v3406_v57, 3 }
 0x2ff   : > { %1524 = vst.msk [vmem:[#allocation4 + $0x3f] sm:$0x1] %vm854_vm11, %v1508_v46  ;;  %v1596_v46 = vld [vmem:[#allocation3 + $0x38] sm:$0xff]  ;;  %v1693_v49 = vrot.slane %v3406_v57, 4  ;;  %v1717_v7 = vrot.slane %v3406_v57, 5 }
 0x300   : > { %v1637_v24 = vadd.f32 %v1621_v43, %v3406_v57  ;;  %v1597_v21 = vadd.f32 %v1596_v46, %v1594_v8  ;;  %v1682_v44 = vadd.f32 %v1666_v55, %v1658_v27  ;;  %v1707_v43 = vadd.f32 %v1691_v54, %v1683_v20 }
 0x301   : > { %v1738_v55 = vrot.slane %v3409_v39, 6  ;;  %v1763_v54 = vrot.slane %v3399_v34, 7 }
 0x302   : > { %v987_v45 = vpop.permute.xlu1 %986  ;;  %v1661_v25 = vadd.f32 %v1645_v9, %v1637_v24  ;;  %v1715_v24 = vrot.slane %v3399_v34, 5  ;;  %v1795_v9 = vrot.slane %v3416_v56, 4 }
 0x303   : > { %v1579_v53 = vld [vmem:[#allocation4 + $0x28] sm:$0xff]  ;;  %1004 = vst.msk [vmem:[#allocation4 + $0x31] sm:$0x1] %vm854_vm11, %v987_v45  ;;  %v1684_v45 = vadd.f32 %v1668_v42, %v1660_v19  ;;  %v1714_v19 = vrot.slane %v3409_v39, 5  ;;  %v1740_v42 = vrot.slane %v3404_v33, 6 }
 0x304   : > { %v1580_v28 = vmul.f32 %v1579_v53, %v1577_v22  ;;  %v1731_v8 = vadd.f32 %v1715_v24, %v1707_v43 }
 0x305   : > { %v3411_v41 = vld [vmem:[#allocation4 + $0x20] sm:$0xff] }
 0x306   : > { %1581 = vst.msk [vmem:[#allocation4 + $0x28] sm:$0xff] %vm728_vm9, %v1580_v28  ;;  %v1622_v50 = vrot.slane %v3411_v41, 1  ;;  %v1646_v15 = vrot.slane %v3411_v41, 2  ;;  %v1670_v22 = vrot.slane %v3411_v41, 3  ;;  %v1685_v28 = vadd.f32 %v1669_v18, %v1661_v25 }
 0x307   : > { %v1694_v61 = vrot.slane %v3411_v41, 4  ;;  %v1718_v14 = vrot.slane %v3411_v41, 5  ;;  %v1739_v25 = vrot.slane %v3399_v34, 6 }
 0x308   : > { %v1638_v40 = vadd.f32 %v1622_v50, %v3411_v41  ;;  %v1709_v0 = vadd.f32 %v1693_v49, %v1685_v28 }
 0x309   : > { %v1755_v18 = vadd.f32 %v1739_v25, %v1731_v8  ;;  %v1797_v8 = vrot.slane %v3416_v56, 6 }
 0x30a   : > { %v1589_v58 = vld [vmem:[#allocation4 + $0x30] sm:$0xff]  ;;  %v989_v37 = vpop.permute.xlu1 %988  ;;  %v1662_v17 = vadd.f32 %v1646_v15, %v1638_v40  ;;  %v1716_v40 = vrot.slane %v3404_v33, 5 }
 0x30b   : > { %v1590_v38 = vmul.f32 %v1589_v58, %v1587_v36  ;;  %1005 = vst.msk [vmem:[#allocation4 + $0x39] sm:$0x1] %vm854_vm11, %v989_v37  ;;  %v1692_v58 = vrot.slane %v3404_v33, 4  ;;  %v3457_v37 = vpop.eup %2366  ;;  %v1779_v49 = vadd.f32 %v1763_v54, %v1755_v18 }
 0x30c   : > { %v1686_v35 = vadd.f32 %v1670_v22, %v1662_v17  ;;  %v1853_v46 = vmul.f32 %v3457_v37, %v3427_v1  ;;  %v1742_v22 = vrot.slane %v3411_v41, 6  ;;  %vm1858_vm15 = vweird.f32 %v3457_v37 }
 0x30d   : > { %1591 = vst.msk [vmem:[#allocation4 + $0x30] sm:$0xff] %vm728_vm9, %v1590_v38  ;;  %v3419_v59 = vld [vmem:[#allocation4 + $0x28] sm:$0xff]  ;;  %vm1859_vm4 = vmor %vm1857_vm12, %vm1858_vm15 }
 0x30e   : > { %v1623_v62 = vrot.slane %v3419_v59, 1  ;;  %v1647_v51 = vrot.slane %v3419_v59, 2  ;;  %v1671_v26 = vrot.slane %v3419_v59, 3  ;;  %v1695_v50 = vrot.slane %v3419_v59, 4 }
 0x30f   : > { %v1719_v15 = vrot.slane %v3419_v59, 5  ;;  %v1767_v34 = vrot.slane %v3419_v59, 7  ;;  %v1854_v24 = vsub.f32 1.0, %v1853_v46 }
 0x310   : > { %v1639_v6 = vadd.f32 %v1623_v62, %v3419_v59  ;;  %v1708_v62 = vadd.f32 %v1692_v58, %v1684_v45 }
 0x312   : > { %v1334_v5 = vpop.permute.xlu1 %1333  ;;  %v1663_v29 = vadd.f32 %v1647_v51, %v1639_v6  ;;  %v1706_v6 = vadd.f32 %v1690_v63, %v1682_v44  ;;  %v1732_v51 = vadd.f32 %v1716_v40, %v1708_v62  ;;  %v1765_v44 = vrot.slane %v3406_v57, 7 }
 0x313   : > { %1350 = vst.msk [vmem:[#allocation4 + $0x3d] sm:$0x1] %vm854_vm11, %v1334_v5  ;;  %v1710_v5 = vadd.f32 %v1694_v61, %v1686_v35  ;;  %v1766_v61 = vrot.slane %v3411_v41, 7 }
 0x314   : > { %v3439_v13 = vld [vmem:[#allocation4 + $0x30] sm:$0xff]  ;;  %v1687_v36 = vadd.f32 %v1671_v26, %v1663_v29  ;;  %v1743_v26 = vrot.slane %v3419_v59, 6  ;;  %v1756_v45 = vadd.f32 %v1740_v42, %v1732_v51 }
 0x315   : > { %v1624_v23 = vrot.slane %v3439_v13, 1  ;;  %v1648_v52 = vrot.slane %v3439_v13, 2  ;;  %v1672_v32 = vrot.slane %v3439_v13, 3  ;;  %v1696_v4 = vrot.slane %v3439_v13, 4 }
 0x316   : > { %v1711_v48 = vadd.f32 %v1695_v50, %v1687_v36  ;;  %v1720_v27 = vrot.slane %v3439_v13, 5  ;;  %v1734_v17 = vadd.f32 %v1718_v14, %v1710_v5  ;;  %v1764_v36 = vrot.slane %v3404_v33, 7 }
 0x317   : > { %v1640_v47 = vadd.f32 %v1624_v23, %v3439_v13  ;;  %v1733_v23 = vadd.f32 %v1717_v7, %v1709_v0  ;;  %v1768_v33 = vrot.slane %v3439_v13, 7 }
 0x318   : > { %v1735_v29 = vadd.f32 %v1719_v15, %v1711_v48  ;;  %v1780_v50 = vadd.f32 %v1764_v36, %v1756_v45  ;;  %v1855_v15 = vmul.f32 %v3457_v37, %v1854_v24 }
 0x319   : > { %v1664_v53 = vadd.f32 %v1648_v52, %v1640_v47  ;;  %v1730_v47 = vadd.f32 %v1714_v19, %v1706_v6  ;;  %v1741_v52 = vrot.slane %v3406_v57, 6  ;;  %v1808_v6 = vadd.f32 %v1792_v3, %v1779_v49 }
 0x31a   : > { %v1599_v30 = vld [vmem:[#allocation4 + $0x38] sm:$0xff]  ;;  %v1759_v35 = vadd.f32 %v1743_v26, %v1735_v29  ;;  %v1809_v59 = vadd.f32 %v1793_v12, %v1780_v50  ;;  %v1863_v3 = vand.u32 2147483648, %v3427_v1 }
 0x31b   : > { %v1600_v38 = vmul.f32 %v1599_v30, %v1597_v21  ;;  %v1688_v60 = vadd.f32 %v1672_v32, %v1664_v53  ;;  %v1757_v28 = vadd.f32 %v1741_v52, %v1733_v23  ;;  %v1744_v30 = vrot.slane %v3439_v13, 6 }
 0x31c   : > { %v1758_v32 = vadd.f32 %v1742_v22, %v1734_v17  ;;  %v1754_v43 = vadd.f32 %v1738_v55, %v1730_v47  ;;  %v1783_v57 = vadd.f32 %v1767_v34, %v1759_v35  ;;  %v1878_v29 = vrot.slane %v1809_v59, 6 }
 0x31d   : > { %1601 = vst.msk [vmem:[#allocation4 + $0x38] sm:$0xff] %vm728_vm9, %v1600_v38  ;;  %v1712_v10 = vadd.f32 %v1696_v4, %v1688_v60  ;;  %v1781_v0 = vadd.f32 %v1765_v44, %v1757_v28  ;;  %v1762_v4 = vrot.slane %v3409_v39, 7  ;;  %v1798_v39 = vrot.slane %v3416_v56, 7 }
 0x31e   : > { %v1782_v5 = vadd.f32 %v1766_v61, %v1758_v32  ;;  %v1812_v25 = vadd.f32 %v1796_v16, %v1783_v57  ;;  %v1856_v47 = vadd.f32 %v3457_v37, %v1855_v15  ;;  %v1864_v55 = vor.u32 1.1754944e-38, %v1863_v3 }
 0x31f   : > { %v1736_v21 = vadd.f32 %v1720_v27, %v1712_v10  ;;  %v1778_v7 = vadd.f32 %v1762_v4, %v1754_v43  ;;  %v1810_v13 = vadd.f32 %v1794_v2, %v1781_v0  ;;  %v1875_v27 = vrot.slane %v1808_v6, 7 }
 0x320   : > { %v1811_v51 = vadd.f32 %v1795_v9, %v1782_v5  ;;  %v1887_v16 = vrot.slane %v1812_v25, 3  ;;  %v1860_v45 = vsel %vm1859_vm4, %v3457_v37, %v1856_v47 }
 0x321   : > { %v1760_v60 = vadd.f32 %v1744_v30, %v1736_v21  ;;  %v1807_v12 = vadd.f32 %v3416_v56, %v1778_v7  ;;  %v1881_v2 = vrot.slane %v1810_v13, 5  ;;  %v1861_v21 = vand.u32 2147483647, %v3427_v1 }
 0x322   : > { %v1884_v52 = vrot.slane %v1811_v51, 4 }
 0x323   : > { %v1784_v41 = vadd.f32 %v1768_v33, %v1760_v60  ;;  %v1877_v18 = vsel %vm1876_vm13, %v1875_v27, %v1807_v12  ;;  %vm1862_vm7 = vcmp.eq.f32.partialorder %v1861_v21, 8.507059e+37 }
 0x324   : > { %v1609_v20 = vld [vmem:[#allocation4 + $0x38] sm:$0xff]  ;;  %v1880_v56 = vsel %vm1879_vm14, %v1878_v29, %v1877_v18  ;;  %v1865_v32 = vsel %vm1862_vm7, %v1864_v55, %v1860_v45  ;;  %v2337_v29 = vld [vmem:[%s3560_s11] ss:$0 sm:$0xff] }
 0x325   : > { %v1625_v53 = vrot.slane %v1609_v20, 1  ;;  %v1649_v38 = vrot.slane %v1609_v20, 2  ;;  %v1673_v63 = vrot.slane %v1609_v20, 3  ;;  %v1697_v40 = vrot.slane %v1609_v20, 4 }
 0x326   : > { %v1721_v14 = vrot.slane %v1609_v20, 5  ;;  %v1745_v23 = vrot.slane %v1609_v20, 6  ;;  %v1813_v17 = vadd.f32 %v1797_v8, %v1784_v41  ;;  %v1769_v46 = vrot.slane %v1609_v20, 7 }
 0x327   : > { %v1641_v58 = vadd.f32 %v1625_v53, %v1609_v20  ;;  %v1883_v26 = vsel %vm1882_vm1, %v1881_v2, %v1880_v56 }
 0x328   : > { %v1890_v22 = vrot.slane %v1813_v17, 2  ;;  %v1886_v53 = vsel %vm1885_vm2, %v1884_v52, %v1883_v26 }
 0x329   : > { %v1665_v62 = vadd.f32 %v1649_v38, %v1641_v58  ;;  %v1889_v28 = vsel %vm1888_vm3, %v1887_v16, %v1886_v53 }
 0x32a   : > { %v1892_v30 = vsel %vm1891_vm5, %v1890_v22, %v1889_v28 }
 0x32b   : > { %v1689_v48 = vadd.f32 %v1673_v63, %v1665_v62 }
 0x32d   : > { %v1713_v10 = vadd.f32 %v1697_v40, %v1689_v48 }
 0x32f   : > { %v1737_v19 = vadd.f32 %v1721_v14, %v1713_v10 }
 0x331   : > { %v1761_v42 = vadd.f32 %v1745_v23, %v1737_v19 }
 0x333   : > { %v1785_v9 = vadd.f32 %v1769_v46, %v1761_v42 }
 0x335   : > { %v1814_v20 = vadd.f32 %v1798_v39, %v1785_v9 }
 0x337   : > { %v1893_v54 = vrot.slane %v1814_v20, 1 }
 0x339   : > { %v1895_v35 = vsel %vm1894_vm6, %v1893_v54, %v1892_v30 }
 0x33a   : > { %v1897_v36 = vmul.f32 %v1895_v35, %v1865_v32  ;;  %v1996_v32 = vstv %s2178_s22 }
 0x33c   : > { %v1899_v58 = vmul.f32 0.70710677, %v1897_v36  ;;  %v1898_v27 = vmul.f32 0.5, %v1897_v36 }
 0x33e   : > { %v1900_v38 = vmul.f32 %v1899_v58, %v1899_v58 }
 0x340   : > { %v1901_v44 = vmin.f32 %v1900_v38, 16.0 }
 0x342   : > { %v1902_v1 = vmul.f32 2.1237322e-06, %v1901_v44  ;;  %v1913_v49 = vmul.f32 3.8918573e-05, %v1901_v44 }
 0x344   : > { %v1903_v43 = vadd.f32 0.00028619796, %v1902_v1  ;;  %v1914_v60 = vadd.f32 0.001143296, %v1913_v49 }
 0x346   : > { %v1904_v61 = vmul.f32 %v1903_v43, %v1901_v44  ;;  %v1915_v50 = vmul.f32 %v1914_v60, %v1901_v44 }
 0x348   : > { %v1916_v37 = vadd.f32 0.014752088, %v1915_v50  ;;  %v1905_v62 = vadd.f32 0.0036580483, %v1904_v61 }
 0x34a   : > { %v1917_v63 = vmul.f32 %v1916_v37, %v1901_v44  ;;  %v1906_v0 = vmul.f32 %v1905_v62, %v1901_v44 }
 0x34c   : > { %v1918_v34 = vadd.f32 0.112945676, %v1917_v63  ;;  %v1907_v33 = vadd.f32 0.05243302, %v1906_v0 }
 0x34e   : > { %v1919_v24 = vmul.f32 %v1918_v34, %v1901_v44  ;;  %v1908_v40 = vmul.f32 %v1907_v33, %v1901_v44 }
 0x350   : > { %v1920_v4 = vadd.f32 0.4994258, %v1919_v24  ;;  %v1909_v57 = vadd.f32 0.18741608, %v1908_v40 }
 0x352   : > { %v1921_v5 = vmul.f32 %v1920_v4, %v1901_v44  ;;  %v1910_v7 = vmul.f32 %v1909_v57, %v1901_v44 }
 0x354   : > { %v1922_v48 = vadd.f32 1.0, %v1921_v5  ;;  %v1911_v10 = vadd.f32 1.1283791, %v1910_v7 }
 0x356   : > { %2368 = vrcp.f32 %v1922_v48  ;;  %v1934_v59 = vand.u32 2147483648, %v1922_v48  ;;  %v1932_v39 = vand.u32 2147483647, %v1922_v48  ;;  %vm1928_vm10 = vweird.f32 %v1922_v48 }
 0x357   : > { %v1912_v3 = vmul.f32 %v1911_v10, %v1899_v58 }
 0x358   : > { %v1935_v15 = vor.u32 1.1754944e-38, %v1934_v59  ;;  %vm1933_vm12 = vcmp.eq.f32.partialorder %v1932_v39, 8.507059e+37 }
 0x35c   : > { %v2369_v6 = vpop.eup %2368 }
 0x35d   : > { %v1924_v41 = vmul.f32 %v2369_v6, %v1922_v48  ;;  %vm1929_vm8 = vweird.f32 %v2369_v6 }
 0x35e   : > { %vm1930_vm11 = vmor %vm1928_vm10, %vm1929_vm8 }
 0x35f   : > { %v1925_v8 = vsub.f32 1.0, %v1924_v41 }
 0x361   : > { %v1926_v14 = vmul.f32 %v2369_v6, %v1925_v8 }
 0x363   : > { %v1927_v13 = vadd.f32 %v2369_v6, %v1926_v14 }
 0x365   : > { %v1931_v51 = vsel %vm1930_vm11, %v2369_v6, %v1927_v13 }
 0x366   : > { %v1936_v19 = vsel %vm1933_vm12, %v1935_v15, %v1931_v51 }
 0x367   : > { %v1937_v23 = vmul.f32 %v1936_v19, %v1912_v3 }
 0x369   : > { %v2188_v25 = vclamps-f32 %v1937_v23, 1.0 }
 0x36b   : > { %v1940_v12 = vadd.f32 1.0, %v2188_v25 }
 0x36d   : > { %v1941_v17 = vmul.f32 %v1940_v12, %v1898_v27 }
 0x36f   : > { %2189 = vmatmul.msk.f32.vlgmr.msrb.gmra.mxu3 %vm728_vm9, %v1941_v17 }
 0x3f2   : > { %v1970_v42 = vpop.f32.mrf.mxu3 }
 0x3f3   : > { %v1971_v46 = vadd.f32 %v2337_v29, %v1970_v42 }
 0x3f5   : > { %v1973_v2 = vadd.f32 %v1971_v46, %v2906_v31 }
 0x3f7   : > { %v1974_v47 = vmul.f32 %v1973_v2, %v1973_v2 }
 0x3f9   : > { %v1975_v52 = vsel %vm587_vm0, %v1974_v47, 0.0 }
 0x3fa   : > { %1976 = vadd.xlane.f32.xlu1 %v1975_v52 }
 0x46d   : > { %v1977_v9 = vpop.xlane.xlu1 %1976 }
 0x46e   : > { %v1978_v18 = vmul.f32 %v1977_v9, %v2903_v11 }
 0x470   : > { %2370 = vrsqrt.f32 %v1978_v18  ;;  %vm1986_vm9 = vcmp.eq.f32.partialorder %v1978_v18, inf  ;;  %v1989_v53 = vand.u32 2147483648, %v1978_v18  ;;  %vm1988_vm13 = vcmp.eq.f32.partialorder %v1978_v18, 0.0 }
 0x476   : > { %v2371_v16 = vpop.eup %2370 }
 0x477   : > { %v1980_v21 = vmul.f32 %v2371_v16, %v1978_v18 }
 0x479   : > { %v1981_v56 = vmul.f32 %v2371_v16, %v1980_v21 }
 0x47b   : > { %v1982_v22 = vmul.f32 0.5, %v1981_v56 }
 0x47d   : > { %v1983_v20 = vsub.f32 1.5, %v1982_v22 }
 0x47f   : > { %v1984_v26 = vmul.f32 %v2371_v16, %v1983_v20 }
 0x481   : > { %v1985_v45 = vmul.f32 %v1984_v26, %v1978_v18 }
 0x483   : > { %v1987_v31 = vsel %vm1986_vm9, %v1978_v18, %v1985_v45 }
 0x484   : > { %v1990_v55 = vsel %vm1988_vm13, %v1989_v53, %v1987_v31 }
 0x485   : > { %v1991_v28 = vadd.f32 1e-05, %v1990_v55 }
 0x487   : > { %2372 = vrcp.f32 %v1991_v28 }
 0x48d   : > { %v2373_v11 = vpop.eup %2372 }
 0x48e   : > { %v1993_v54 = vmul.f32 %v2373_v11, %v1991_v28 }
 0x490   : > { %v1994_v30 = vsub.f32 2.0, %v1993_v54 }
 0x492   : > { %v1995_v35 = vmul.f32 %v2373_v11, %v1994_v30 }
 0x494   : > { %v1997_v36 = vmul.f32 %v1996_v32, %v1995_v35 }
 0x496   : > { %v1998_v58 = vmul.f32 %v1997_v36, %v1973_v2 }
 0x498   : > { %1999 = vst.msk [vmem:[%s578_s21] sm:$0xff] %vm587_vm0, %v1998_v58 }
 0x499   : > { %2626 = shalt.err (!%p2623_p8)
}
 0x49a   : > { %2226 = dma.vmem_to_hbm [thread:$0]  (%p2812_p5), %s2014_s25, 128, %s2016_s29, %s2001_s3  }
 0x49b PF: > { %s3588_s22 = sld [smem:[#allocation28_spill]] }
 0x49c   : > { %s3589_s0 = sld [smem:[#allocation26_spill]] }
 0x4a1   : > { %p2273_p9 = scmp.ge.s32.totalorder %s3588_s22, 2 }
 0x4a2   : > { %s2027_s2 = sand.u32 1, %s3589_s0  }
 0x4a3   : > { %p2254_p10 = pnand %p2273_p9, %p2816_p6  ;;  %s2028_s19 = scalar_lea.sflag [#allocation7], %s2027_s2 }
 0x4a5   : > { %p2255_p11 = pneg %p2254_p10 }
 0x4a7   : > { %2664 = dma.done.wait (%p2255_p11), %s2028_s19, 128  }
 0x4a8   : > { %2666 = vsyncadd (%p2255_p11), %s2028_s19, 4294967168  ;;  %s3591_s16 = sld [smem:[#allocation29_spill]]  ;;  %s3594_s29 = smov %s2673_s30 }
 0x4a9   : > { %s3592_s24 = sld [smem:[#allocation27_spill]] }
 0x4aa   : > { %s3593_s15 = sld [smem:[#allocation30_spill]] }
 0x4ae   : > { %p29_p12 = scmp.ge.s32.totalorder %s3591_s16, 4  }
 0x4af   : > { %s3595_s30 = smov %s3592_s24 }
 0x4b0   :  { %31 = sbr.rel (!%p29_p12) target bundleno = 13 (0xd), region = 166 }
 0x4b5   :  { %2034 = vsyncpa [#allocation6], 1 }
 0x4b6   :  { %2036 = vsyncpa [#allocation6 + $0x1], 1 }
 0x4b7   :  { %2037 = vsyncpa [#allocation11], 1 }
 0x4b8   :  { %2038 = vsyncpa [#allocation14], 1 }
 0x4b9   :  { %2039 = vsyncpa [#allocation17], 1 }
 0x4ba   :  { %2040 = vsyncpa [#allocation7], 1 }
 0x4bb   :  { %2042 = vsyncpa [#allocation7 + $0x1], 1 }
 0x4bc   :  { %2043 = vsyncpa [#allocation8], 1 }
 0x4bd   :  { %2045 = vsyncpa [#allocation8 + $0x1], 1 }

</bundles_post_ra>
